<compile_context>
chip_gen: v5e
topology: v5e:2x2
jax: 0.10.0
libtpu: 0.0.40
codegen_flags: <defaults>
</compile_context>

<pallas_src>
import math
import functools

import jax
import jax.numpy as jnp
from jax.experimental import pallas as pl
from jax.experimental.pallas import tpu as pltpu

D_MODEL = 32
HEADS = 4
LN_EPS = 1e-5


def _num_tensorcores() -> int:
    """TensorCores per JAX device: 2 on v7x (and megacore v4/v5p), else 1."""
    try:
        kind = jax.devices()[0].device_kind.lower()
    except Exception:
        return 1
    if any(t in kind for t in ("v7", "7x", "v4", "v5p")):
        return 2
    return 1


def _layernorm(h, gamma, beta):
    # h: (R, D); gamma/beta: (1, D)
    mu = jnp.mean(h, axis=-1, keepdims=True)
    var = jnp.mean((h - mu) ** 2, axis=-1, keepdims=True)
    return (h - mu) * jax.lax.rsqrt(var + LN_EPS) * gamma + beta


def encoder_layer_kernel(
    x_ref, mask_ref, pack_ref, wqkv_ref, wo3_ref, w1_ref, w2_ref, o_ref,
    *, tb, seq, d_model, heads, d_head,
):
    R = tb * seq                                   # rows in this slab

    # (tb, S, D) -> (R, D): leading-dim merge, no lane relayout.
    x = x_ref[...].astype(jnp.float32).reshape(R, d_model)

    # Packed biases / LayerNorm params, one (8,128) block.
    pack = pack_ref[...]
    ln1_g = pack[0:1, :d_model]
    ln1_b = pack[1:2, :d_model]
    b_qkv = pack[2:3, :]                           # (1,128); cols 3D: are zero pad
    b_o   = pack[3:4, :d_model]
    ln2_g = pack[4:5, :d_model]
    ln2_b = pack[5:6, :d_model]
    b_1   = pack[6:7, :2 * d_model]
    b_2   = pack[7:8, :d_model]

    # ---- x2 = norm_1(x) ----
    x2 = _layernorm(x, ln1_g, ln1_b)

    # ---- fused QKV projection: one lane-dense (R,128) matmul + one bias ----
    qkv = jnp.dot(x2, wqkv_ref[...], preferred_element_type=jnp.float32) + b_qkv

    # Stack heads along a leading batch axis (static lane slices, no transposes).
    def split_heads(off):
        return jnp.stack(
            [qkv[:, off + h * d_head: off + (h + 1) * d_head] for h in range(heads)],
            axis=0)                                # (heads, R, d_head)

    q3 = split_heads(0)
    k3 = split_heads(d_model)
    v3 = split_heads(2 * d_model)

    # Batched scores for all heads at once; single softmax chain.
    s = jnp.einsum("hqd,hkd->hqk", q3, k3,
                   preferred_element_type=jnp.float32) * (1.0 / math.sqrt(d_head))
    # Host-precomputed additive block-diagonal mask keeps different batch samples
    # in the slab from attending to each other (all-zero when tb == 1).
    s = s + mask_ref[...]
    s = s - jnp.max(s, axis=-1, keepdims=True)
    p = jnp.exp(s)
    p = p / jnp.sum(p, axis=-1, keepdims=True)     # exact divide (not bottleneck)

    ctx3 = jnp.einsum("hqk,hkd->hqd", p, v3, preferred_element_type=jnp.float32)

    # Head concat folded into the output projection: batched over heads, then sum.
    attn3 = jnp.einsum("hqd,hde->hqe", ctx3, wo3_ref[...],
                       preferred_element_type=jnp.float32)     # (heads, R, D)
    attn = jnp.sum(attn3, axis=0) + b_o

    # ---- residual 1 (dropout_1 identity in eval) ----
    x = x + attn

    # ---- x2 = norm_2(x), feed-forward, residual 2 ----
    x2 = _layernorm(x, ln2_g, ln2_b)
    h1 = jnp.dot(x2, w1_ref[...], preferred_element_type=jnp.float32) + b_1
    h1 = jnp.maximum(h1, 0.0)                      # ReLU (ff dropout identity)
    ff = jnp.dot(h1, w2_ref[...], preferred_element_type=jnp.float32) + b_2
    x = x + ff

    o_ref[...] = x.reshape(o_ref.shape).astype(o_ref.dtype)


def _const_map(ndim):
    return lambda i: (0,) * ndim


def encoder_layer(x, params, *, heads=HEADS, batch_block=None):
    (ln1_g, ln1_b, wq, bq, wk, bk, wv, bv, wo, bo,
     ln2_g, ln2_b, w1, b1, w2, b2) = params
    B, S, D = x.shape
    assert D % heads == 0
    d_head = D // heads
    assert 3 * D <= 128 and 2 * D <= 128, "fused-QKV / bias-pack layout assumes small d_model"

    # Fused Wq|Wk|Wv -> (D, 3D), zero-padded to a lane-dense (D, 128) weight.
    w_qkv = jnp.concatenate([wq, wk, wv], axis=1).astype(jnp.float32)
    w_qkv = jnp.pad(w_qkv, ((0, 0), (0, 128 - 3 * D)))

    # Pack all small bias / LayerNorm vectors into one (8, 128) parameter block.
    pack = jnp.zeros((8, 128), jnp.float32)
    pack = pack.at[0, :D].set(ln1_g.reshape(-1))
    pack = pack.at[1, :D].set(ln1_b.reshape(-1))
    pack = pack.at[2, :3 * D].set(jnp.concatenate([bq, bk, bv], axis=1).reshape(-1))
    pack = pack.at[3, :D].set(bo.reshape(-1))
    pack = pack.at[4, :D].set(ln2_g.reshape(-1))
    pack = pack.at[5, :D].set(ln2_b.reshape(-1))
    pack = pack.at[6, :2 * D].set(b1.reshape(-1))
    pack = pack.at[7, :D].set(b2.reshape(-1))

    # Output projection reshaped so per-head weight slices are a batch axis.
    wo3 = wo.astype(jnp.float32).reshape(heads, d_head, D)

    # Core-count-aware batch slab: 1 grid step on single-TC chips, one per TC on
    # multi-TC chips; cap slab rows so the (R, R) masked score buffer stays small.
    if batch_block is None:
        n_cores = _num_tensorcores()
        batch_block = B // n_cores if (n_cores > 1 and B % n_cores == 0) else B
        cap = max(1, 256 // S)
        if batch_block > cap:
            batch_block = cap
            while B % batch_block:
                batch_block -= 1
    assert B % batch_block == 0
    grid = (B // batch_block,)
    R = batch_block * S

    # Host-precomputed additive block-diagonal mask (all-zero when batch_block==1).
    rows = jnp.arange(R) // S
    mask = jnp.where(rows[:, None] == rows[None, :], 0.0, -1e30).astype(jnp.float32)

    weights = (pack, w_qkv, wo3, w1.astype(jnp.float32), w2.astype(jnp.float32))
    # Constant block indices -> weights stay resident across grid steps.
    weight_specs = [pl.BlockSpec(w.shape, _const_map(w.ndim)) for w in weights]

    kernel = functools.partial(
        encoder_layer_kernel,
        tb=batch_block, seq=S, d_model=D, heads=heads, d_head=d_head)

    out = pl.pallas_call(
        kernel,
        out_shape=jax.ShapeDtypeStruct((B, S, D), x.dtype),
        grid_spec=pltpu.PrefetchScalarGridSpec(
            num_scalar_prefetch=0,
            grid=grid,
            in_specs=[pl.BlockSpec((batch_block, S, D), lambda i: (i, 0, 0)),
                      pl.BlockSpec((R, R), lambda i: (0, 0))] + weight_specs,
            out_specs=pl.BlockSpec((batch_block, S, D), lambda i: (i, 0, 0)),
        ),
        compiler_params=pltpu.CompilerParams(dimension_semantics=("parallel",)),
    )(x, mask, *weights)
    return out


def trans_block(x, params_list, *, heads=HEADS, batch_block=None):
    """transBlock: chain of EncoderLayers, each one fused Pallas call."""
    for p in params_list:
        x = encoder_layer(x, p, heads=heads, batch_block=batch_block)
    return x


def make_params(key, d_model=D_MODEL):
    ks = jax.random.split(key, 8)
    scale = 0.05
    ln1_g = jnp.ones((1, d_model), jnp.float32)
    ln1_b = jnp.zeros((1, d_model), jnp.float32)
    wq = scale * jax.random.normal(ks[0], (d_model, d_model), jnp.float32)
    wk = scale * jax.random.normal(ks[1], (d_model, d_model), jnp.float32)
    wv = scale * jax.random.normal(ks[2], (d_model, d_model), jnp.float32)
    wo = scale * jax.random.normal(ks[3], (d_model, d_model), jnp.float32)
    bq = scale * jax.random.normal(ks[4], (1, d_model), jnp.float32)
    bk = scale * jax.random.normal(ks[5], (1, d_model), jnp.float32)
    bv = scale * jax.random.normal(ks[6], (1, d_model), jnp.float32)
    bo = jnp.zeros((1, d_model), jnp.float32)
    ln2_g = jnp.ones((1, d_model), jnp.float32)
    ln2_b = jnp.zeros((1, d_model), jnp.float32)
    w1 = scale * jax.random.normal(ks[7], (d_model, 2 * d_model), jnp.float32)
    b1 = jnp.zeros((1, 2 * d_model), jnp.float32)
    w2 = scale * jax.random.normal(jax.random.fold_in(key, 99),
                                   (2 * d_model, d_model), jnp.float32)
    b2 = jnp.zeros((1, d_model), jnp.float32)
    return (ln1_g, ln1_b, wq, bq, wk, bk, wv, bv, wo, bo,
            ln2_g, ln2_b, w1, b1, w2, b2)


def encoder_layer_ref(x, params, *, heads=HEADS):
    """Pure-JAX reference matching the PyTorch EncoderLayer forward (eval)."""
    (ln1_g, ln1_b, wq, bq, wk, bk, wv, bv, wo, bo,
     ln2_g, ln2_b, w1, b1, w2, b2) = params
    B, S, D = x.shape
    dh = D // heads

    def ln(h, g, b):
        mu = jnp.mean(h, axis=-1, keepdims=True)
        var = jnp.mean((h - mu) ** 2, axis=-1, keepdims=True)
        return (h - mu) * jax.lax.rsqrt(var + LN_EPS) * g + b

    x2 = ln(x, ln1_g, ln1_b)
    q = (x2 @ wq + bq).reshape(B, S, heads, dh).transpose(0, 2, 1, 3)
    k = (x2 @ wk + bk).reshape(B, S, heads, dh).transpose(0, 2, 1, 3)
    v = (x2 @ wv + bv).reshape(B, S, heads, dh).transpose(0, 2, 1, 3)
    scores = jnp.einsum("bhqd,bhkd->bhqk", q, k) / math.sqrt(dh)
    p = jax.nn.softmax(scores, axis=-1)
    o = jnp.einsum("bhqk,bhkd->bhqd", p, v).transpose(0, 2, 1, 3).reshape(B, S, D)
    x = x + (o @ wo + bo)
    x2 = ln(x, ln2_g, ln2_b)
    ff = jnp.maximum(x2 @ w1 + b1, 0.0) @ w2 + b2
    return x + ff


def trans_block_ref(x, params_list, *, heads=HEADS):
    for p in params_list:
        x = encoder_layer_ref(x, p, heads=heads)
    return x


if __name__ == "__main__":
    key = jax.random.PRNGKey(0)
    kx, kp = jax.random.split(key)

    B, S, D, n_trans = 4, 8, D_MODEL, 2
    x = jax.random.normal(kx, (B, S, D), jnp.float32)
    params_list = [make_params(jax.random.fold_in(kp, i), D) for i in range(n_trans)]

    out = jax.block_until_ready(trans_block(x, params_list))
    ref = trans_block_ref(x, params_list)

    assert out.shape == (B, S, D)
    err = float(jnp.max(jnp.abs(out - ref)))
    # Tolerance covers MXU reduced-precision f32 matmul passes vs XLA reference;
    # the softmax path now uses an exact divide.
    assert jnp.allclose(out, ref, atol=2e-3, rtol=2e-3), f"max abs err {err}"

    print("KERNEL_OK")
</pallas_src>

<mosaic_0001>
module attributes {stable_mosaic.version = 11 : i64} {
  func.func @encoder_layer_kernel(%arg0: i32, %arg1: memref<4x8x32xf32, #tpu.memory_space<vmem>>, %arg2: memref<32x32xf32, #tpu.memory_space<vmem>>, %arg3: memref<8x128xf32, #tpu.memory_space<vmem>>, %arg4: memref<32x128xf32, #tpu.memory_space<vmem>>, %arg5: memref<4x8x32xf32, #tpu.memory_space<vmem>>, %arg6: memref<32x64xf32, #tpu.memory_space<vmem>>, %arg7: memref<64x32xf32, #tpu.memory_space<vmem>>, %arg8: memref<4x8x32xf32, #tpu.memory_space<vmem>>) attributes {dimension_semantics = [#tpu.dimension_semantics<parallel>], iteration_bounds = array<i64: 1>, scalar_prefetch = 0 : i64, scratch_operands = 0 : i64, tpu.core_type = #tpu.core_type<tc>, window_params = [{transform_indices = @transform_0, window_bounds = array<i64: 4, 8, 32>}, {pipeline_mode = #tpu.pipeline_mode<synchronous>, transform_indices = @transform_1, window_bounds = array<i64: 32, 32>}, {pipeline_mode = #tpu.pipeline_mode<synchronous>, transform_indices = @transform_2, window_bounds = array<i64: 8, 128>}, {pipeline_mode = #tpu.pipeline_mode<synchronous>, transform_indices = @transform_3, window_bounds = array<i64: 32, 128>}, {pipeline_mode = #tpu.pipeline_mode<synchronous>, transform_indices = @transform_4, window_bounds = array<i64: 4, 8, 32>}, {pipeline_mode = #tpu.pipeline_mode<synchronous>, transform_indices = @transform_5, window_bounds = array<i64: 32, 64>}, {pipeline_mode = #tpu.pipeline_mode<synchronous>, transform_indices = @transform_6, window_bounds = array<i64: 64, 32>}, {transform_indices = @transform_7, window_bounds = array<i64: 4, 8, 32>}]} {
    %c0 = arith.constant 0 : index
    %c0_0 = arith.constant 0 : index
    %c0_1 = arith.constant 0 : index
    %0 = vector.load %arg1[%c0, %c0_0, %c0_1] : memref<4x8x32xf32, #tpu.memory_space<vmem>>, vector<4x8x32xf32>
    %1 = vector.shape_cast %0 : vector<4x8x32xf32> to vector<32x32xf32>
    %c0_2 = arith.constant 0 : index
    %c0_3 = arith.constant 0 : index
    %2 = vector.load %arg3[%c0_2, %c0_3] : memref<8x128xf32, #tpu.memory_space<vmem>>, vector<8x128xf32>
    %3 = vector.extract_strided_slice %2 {offsets = [0, 0], sizes = [1, 32], strides = [1, 1]} : vector<8x128xf32> to vector<1x32xf32>
    %4 = vector.extract_strided_slice %2 {offsets = [1, 0], sizes = [1, 32], strides = [1, 1]} : vector<8x128xf32> to vector<1x32xf32>
    %5 = vector.extract_strided_slice %2 {offsets = [2, 0], sizes = [1, 128], strides = [1, 1]} : vector<8x128xf32> to vector<1x128xf32>
    %6 = vector.extract_strided_slice %2 {offsets = [3, 0], sizes = [1, 32], strides = [1, 1]} : vector<8x128xf32> to vector<1x32xf32>
    %7 = vector.extract_strided_slice %2 {offsets = [4, 0], sizes = [1, 32], strides = [1, 1]} : vector<8x128xf32> to vector<1x32xf32>
    %8 = vector.extract_strided_slice %2 {offsets = [5, 0], sizes = [1, 32], strides = [1, 1]} : vector<8x128xf32> to vector<1x32xf32>
    %9 = vector.extract_strided_slice %2 {offsets = [6, 0], sizes = [1, 64], strides = [1, 1]} : vector<8x128xf32> to vector<1x64xf32>
    %10 = vector.extract_strided_slice %2 {offsets = [7, 0], sizes = [1, 32], strides = [1, 1]} : vector<8x128xf32> to vector<1x32xf32>
    %cst = arith.constant dense<0.000000e+00> : vector<32xf32>
    %11 = vector.multi_reduction <add>, %1, %cst [1] : vector<32x32xf32> to vector<32xf32>
    %12 = vector.shape_cast %11 : vector<32xf32> to vector<32x1xf32>
    %cst_4 = arith.constant 3.200000e+01 : f32
    %13 = vector.broadcast %cst_4 : f32 to vector<32x1xf32>
    %14 = arith.divf %12, %13 : vector<32x1xf32>
    %15 = vector.broadcast %14 : vector<32x1xf32> to vector<32x32xf32>
    %16 = arith.subf %1, %15 : vector<32x32xf32>
    %17 = arith.mulf %16, %16 : vector<32x32xf32>
    %cst_5 = arith.constant dense<0.000000e+00> : vector<32xf32>
    %18 = vector.multi_reduction <add>, %17, %cst_5 [1] : vector<32x32xf32> to vector<32xf32>
    %19 = vector.shape_cast %18 : vector<32xf32> to vector<32x1xf32>
    %cst_6 = arith.constant 3.200000e+01 : f32
    %20 = vector.broadcast %cst_6 : f32 to vector<32x1xf32>
    %21 = arith.divf %19, %20 : vector<32x1xf32>
    %22 = vector.broadcast %14 : vector<32x1xf32> to vector<32x32xf32>
    %23 = arith.subf %1, %22 : vector<32x32xf32>
    %cst_7 = arith.constant 9.99999974E-6 : f32
    %24 = vector.broadcast %cst_7 : f32 to vector<32x1xf32>
    %25 = arith.addf %21, %24 : vector<32x1xf32>
    %26 = math.rsqrt %25 : vector<32x1xf32>
    %27 = vector.broadcast %26 : vector<32x1xf32> to vector<32x32xf32>
    %28 = arith.mulf %23, %27 : vector<32x32xf32>
    %29 = vector.broadcast %3 : vector<1x32xf32> to vector<32x32xf32>
    %30 = arith.mulf %28, %29 : vector<32x32xf32>
    %31 = vector.broadcast %4 : vector<1x32xf32> to vector<32x32xf32>
    %32 = arith.addf %30, %31 : vector<32x32xf32>
    %c0_8 = arith.constant 0 : index
    %c0_9 = arith.constant 0 : index
    %33 = vector.load %arg4[%c0_8, %c0_9] : memref<32x128xf32, #tpu.memory_space<vmem>>, vector<32x128xf32>
    %cst_10 = arith.constant dense<0.000000e+00> : vector<32x128xf32>
    %34 = tpu.matmul %32, %33, %cst_10 {dimension_numbers = #tpu.dot_dimension_numbers<[1], [0], [0], [1], [0, 0, 1, 1], [], []>} : vector<32x32xf32>, vector<32x128xf32>, vector<32x128xf32> -> vector<32x128xf32>
    %35 = vector.broadcast %5 : vector<1x128xf32> to vector<32x128xf32>
    %36 = arith.addf %34, %35 : vector<32x128xf32>
    %37 = vector.extract_strided_slice %36 {offsets = [0, 0], sizes = [32, 8], strides = [1, 1]} : vector<32x128xf32> to vector<32x8xf32>
    %38 = vector.extract_strided_slice %36 {offsets = [0, 8], sizes = [32, 8], strides = [1, 1]} : vector<32x128xf32> to vector<32x8xf32>
    %39 = vector.extract_strided_slice %36 {offsets = [0, 16], sizes = [32, 8], strides = [1, 1]} : vector<32x128xf32> to vector<32x8xf32>
    %40 = vector.extract_strided_slice %36 {offsets = [0, 24], sizes = [32, 8], strides = [1, 1]} : vector<32x128xf32> to vector<32x8xf32>
    %41 = vector.shape_cast %37 : vector<32x8xf32> to vector<1x32x8xf32>
    %42 = vector.shape_cast %38 : vector<32x8xf32> to vector<1x32x8xf32>
    %43 = vector.shape_cast %39 : vector<32x8xf32> to vector<1x32x8xf32>
    %44 = vector.shape_cast %40 : vector<32x8xf32> to vector<1x32x8xf32>
    %45 = tpu.concatenate %41, %42, %43, %44 in 0 : vector<1x32x8xf32>, vector<1x32x8xf32>, vector<1x32x8xf32>, vector<1x32x8xf32> -> vector<4x32x8xf32>
    %46 = vector.extract_strided_slice %36 {offsets = [0, 32], sizes = [32, 8], strides = [1, 1]} : vector<32x128xf32> to vector<32x8xf32>
    %47 = vector.extract_strided_slice %36 {offsets = [0, 40], sizes = [32, 8], strides = [1, 1]} : vector<32x128xf32> to vector<32x8xf32>
    %48 = vector.extract_strided_slice %36 {offsets = [0, 48], sizes = [32, 8], strides = [1, 1]} : vector<32x128xf32> to vector<32x8xf32>
    %49 = vector.extract_strided_slice %36 {offsets = [0, 56], sizes = [32, 8], strides = [1, 1]} : vector<32x128xf32> to vector<32x8xf32>
    %50 = vector.shape_cast %46 : vector<32x8xf32> to vector<1x32x8xf32>
    %51 = vector.shape_cast %47 : vector<32x8xf32> to vector<1x32x8xf32>
    %52 = vector.shape_cast %48 : vector<32x8xf32> to vector<1x32x8xf32>
    %53 = vector.shape_cast %49 : vector<32x8xf32> to vector<1x32x8xf32>
    %54 = tpu.concatenate %50, %51, %52, %53 in 0 : vector<1x32x8xf32>, vector<1x32x8xf32>, vector<1x32x8xf32>, vector<1x32x8xf32> -> vector<4x32x8xf32>
    %55 = vector.extract_strided_slice %36 {offsets = [0, 64], sizes = [32, 8], strides = [1, 1]} : vector<32x128xf32> to vector<32x8xf32>
    %56 = vector.extract_strided_slice %36 {offsets = [0, 72], sizes = [32, 8], strides = [1, 1]} : vector<32x128xf32> to vector<32x8xf32>
    %57 = vector.extract_strided_slice %36 {offsets = [0, 80], sizes = [32, 8], strides = [1, 1]} : vector<32x128xf32> to vector<32x8xf32>
    %58 = vector.extract_strided_slice %36 {offsets = [0, 88], sizes = [32, 8], strides = [1, 1]} : vector<32x128xf32> to vector<32x8xf32>
    %59 = vector.shape_cast %55 : vector<32x8xf32> to vector<1x32x8xf32>
    %60 = vector.shape_cast %56 : vector<32x8xf32> to vector<1x32x8xf32>
    %61 = vector.shape_cast %57 : vector<32x8xf32> to vector<1x32x8xf32>
    %62 = vector.shape_cast %58 : vector<32x8xf32> to vector<1x32x8xf32>
    %63 = tpu.concatenate %59, %60, %61, %62 in 0 : vector<1x32x8xf32>, vector<1x32x8xf32>, vector<1x32x8xf32>, vector<1x32x8xf32> -> vector<4x32x8xf32>
    "tpu.trace_start"() <{level = 10 : i32, message = "hqd,hkd->hqk"}> : () -> ()
    %cst_11 = arith.constant dense<0.000000e+00> : vector<4x32x32xf32>
    %64 = tpu.matmul %45, %54, %cst_11 {dimension_numbers = #tpu.dot_dimension_numbers<[2], [2], [1], [1], [0, 0, 0, 1, 1, 1], [0], [0]>} : vector<4x32x8xf32>, vector<4x32x8xf32>, vector<4x32x32xf32> -> vector<4x32x32xf32>
    "tpu.trace_stop"() : () -> ()
    %cst_12 = arith.constant 0.353553385 : f32
    %65 = vector.broadcast %cst_12 : f32 to vector<4x32x32xf32>
    %66 = arith.mulf %64, %65 : vector<4x32x32xf32>
    %c0_13 = arith.constant 0 : index
    %c0_14 = arith.constant 0 : index
    %67 = vector.load %arg2[%c0_13, %c0_14] : memref<32x32xf32, #tpu.memory_space<vmem>>, vector<32x32xf32>
    %68 = vector.shape_cast %67 : vector<32x32xf32> to vector<1x32x32xf32>
    %69 = vector.broadcast %68 : vector<1x32x32xf32> to vector<4x32x32xf32>
    %70 = arith.addf %66, %69 : vector<4x32x32xf32>
    %cst_15 = arith.constant dense<0xFF800000> : vector<4x32xf32>
    %71 = vector.multi_reduction <maximumf>, %70, %cst_15 [2] : vector<4x32x32xf32> to vector<4x32xf32>
    %72 = vector.shape_cast %71 : vector<4x32xf32> to vector<4x32x1xf32>
    %73 = vector.broadcast %72 : vector<4x32x1xf32> to vector<4x32x32xf32>
    %74 = arith.subf %70, %73 : vector<4x32x32xf32>
    %75 = math.exp %74 : vector<4x32x32xf32>
    %cst_16 = arith.constant dense<0.000000e+00> : vector<4x32xf32>
    %76 = vector.multi_reduction <add>, %75, %cst_16 [2] : vector<4x32x32xf32> to vector<4x32xf32>
    %77 = vector.shape_cast %76 : vector<4x32xf32> to vector<4x32x1xf32>
    %78 = vector.broadcast %77 : vector<4x32x1xf32> to vector<4x32x32xf32>
    %79 = arith.divf %75, %78 : vector<4x32x32xf32>
    "tpu.trace_start"() <{level = 10 : i32, message = "hqk,hkd->hqd"}> : () -> ()
    %cst_17 = arith.constant dense<0.000000e+00> : vector<4x32x8xf32>
    %80 = tpu.matmul %79, %63, %cst_17 {dimension_numbers = #tpu.dot_dimension_numbers<[2], [1], [1], [2], [0, 0, 0, 1, 1, 2], [0], [0]>} : vector<4x32x32xf32>, vector<4x32x8xf32>, vector<4x32x8xf32> -> vector<4x32x8xf32>
    "tpu.trace_stop"() : () -> ()
    %c0_18 = arith.constant 0 : index
    %c0_19 = arith.constant 0 : index
    %c0_20 = arith.constant 0 : index
    %81 = vector.load %arg5[%c0_18, %c0_19, %c0_20] : memref<4x8x32xf32, #tpu.memory_space<vmem>>, vector<4x8x32xf32>
    "tpu.trace_start"() <{level = 10 : i32, message = "hqd,hde->hqe"}> : () -> ()
    %cst_21 = arith.constant dense<0.000000e+00> : vector<4x32x32xf32>
    %82 = tpu.matmul %80, %81, %cst_21 {dimension_numbers = #tpu.dot_dimension_numbers<[2], [1], [1], [2], [0, 0, 0, 1, 1, 2], [0], [0]>} : vector<4x32x8xf32>, vector<4x8x32xf32>, vector<4x32x32xf32> -> vector<4x32x32xf32>
    "tpu.trace_stop"() : () -> ()
    %cst_22 = arith.constant dense<0.000000e+00> : vector<32x32xf32>
    %83 = vector.multi_reduction <add>, %82, %cst_22 [0] : vector<4x32x32xf32> to vector<32x32xf32>
    %84 = vector.broadcast %6 : vector<1x32xf32> to vector<32x32xf32>
    %85 = arith.addf %83, %84 : vector<32x32xf32>
    %86 = arith.addf %1, %85 : vector<32x32xf32>
    %cst_23 = arith.constant dense<0.000000e+00> : vector<32xf32>
    %87 = vector.multi_reduction <add>, %86, %cst_23 [1] : vector<32x32xf32> to vector<32xf32>
    %88 = vector.shape_cast %87 : vector<32xf32> to vector<32x1xf32>
    %cst_24 = arith.constant 3.200000e+01 : f32
    %89 = vector.broadcast %cst_24 : f32 to vector<32x1xf32>
    %90 = arith.divf %88, %89 : vector<32x1xf32>
    %91 = vector.broadcast %90 : vector<32x1xf32> to vector<32x32xf32>
    %92 = arith.subf %86, %91 : vector<32x32xf32>
    %93 = arith.mulf %92, %92 : vector<32x32xf32>
    %cst_25 = arith.constant dense<0.000000e+00> : vector<32xf32>
    %94 = vector.multi_reduction <add>, %93, %cst_25 [1] : vector<32x32xf32> to vector<32xf32>
    %95 = vector.shape_cast %94 : vector<32xf32> to vector<32x1xf32>
    %cst_26 = arith.constant 3.200000e+01 : f32
    %96 = vector.broadcast %cst_26 : f32 to vector<32x1xf32>
    %97 = arith.divf %95, %96 : vector<32x1xf32>
    %98 = vector.broadcast %90 : vector<32x1xf32> to vector<32x32xf32>
    %99 = arith.subf %86, %98 : vector<32x32xf32>
    %cst_27 = arith.constant 9.99999974E-6 : f32
    %100 = vector.broadcast %cst_27 : f32 to vector<32x1xf32>
    %101 = arith.addf %97, %100 : vector<32x1xf32>
    %102 = math.rsqrt %101 : vector<32x1xf32>
    %103 = vector.broadcast %102 : vector<32x1xf32> to vector<32x32xf32>
    %104 = arith.mulf %99, %103 : vector<32x32xf32>
    %105 = vector.broadcast %7 : vector<1x32xf32> to vector<32x32xf32>
    %106 = arith.mulf %104, %105 : vector<32x32xf32>
    %107 = vector.broadcast %8 : vector<1x32xf32> to vector<32x32xf32>
    %108 = arith.addf %106, %107 : vector<32x32xf32>
    %c0_28 = arith.constant 0 : index
    %c0_29 = arith.constant 0 : index
    %109 = vector.load %arg6[%c0_28, %c0_29] : memref<32x64xf32, #tpu.memory_space<vmem>>, vector<32x64xf32>
    %cst_30 = arith.constant dense<0.000000e+00> : vector<32x64xf32>
    %110 = tpu.matmul %108, %109, %cst_30 {dimension_numbers = #tpu.dot_dimension_numbers<[1], [0], [0], [1], [0, 0, 1, 1], [], []>} : vector<32x32xf32>, vector<32x64xf32>, vector<32x64xf32> -> vector<32x64xf32>
    %111 = vector.broadcast %9 : vector<1x64xf32> to vector<32x64xf32>
    %112 = arith.addf %110, %111 : vector<32x64xf32>
    %cst_31 = arith.constant 0.000000e+00 : f32
    %113 = vector.broadcast %cst_31 : f32 to vector<32x64xf32>
    %114 = arith.maximumf %112, %113 : vector<32x64xf32>
    %c0_32 = arith.constant 0 : index
    %c0_33 = arith.constant 0 : index
    %115 = vector.load %arg7[%c0_32, %c0_33] : memref<64x32xf32, #tpu.memory_space<vmem>>, vector<64x32xf32>
    %cst_34 = arith.constant dense<0.000000e+00> : vector<32x32xf32>
    %116 = tpu.matmul %114, %115, %cst_34 {dimension_numbers = #tpu.dot_dimension_numbers<[1], [0], [0], [1], [0, 0, 1, 1], [], []>} : vector<32x64xf32>, vector<64x32xf32>, vector<32x32xf32> -> vector<32x32xf32>
    %117 = vector.broadcast %10 : vector<1x32xf32> to vector<32x32xf32>
    %118 = arith.addf %116, %117 : vector<32x32xf32>
    %119 = arith.addf %86, %118 : vector<32x32xf32>
    %120 = vector.shape_cast %119 : vector<32x32xf32> to vector<4x8x32xf32>
    %c0_35 = arith.constant 0 : index
    %c0_36 = arith.constant 0 : index
    %c0_37 = arith.constant 0 : index
    %121 = vector.load %arg8[%c0_35, %c0_36, %c0_37] : memref<4x8x32xf32, #tpu.memory_space<vmem>>, vector<4x8x32xf32>
    tpu.vector_store %arg8[%c0_35, %c0_36, %c0_37], %120 {strides = array<i32>} : memref<4x8x32xf32, #tpu.memory_space<vmem>>, vector<4x8x32xf32>,
    return
  }
  func.func @transform_0(%arg0: i32) -> (i32, i32, i32) {
    %c0_i32 = arith.constant 0 : i32
    %c0_i32_0 = arith.constant 0 : i32
    %c0_i32_1 = arith.constant 0 : i32
    return %arg0, %c0_i32, %c0_i32_0 : i32, i32, i32
  }
  func.func @transform_1(%arg0: i32) -> (i32, i32) {
    %c0_i32 = arith.constant 0 : i32
    %c0_i32_0 = arith.constant 0 : i32
    %c0_i32_1 = arith.constant 0 : i32
    return %c0_i32, %c0_i32_0 : i32, i32
  }
  func.func @transform_2(%arg0: i32) -> (i32, i32) {
    %c0_i32 = arith.constant 0 : i32
    %c0_i32_0 = arith.constant 0 : i32
    %c0_i32_1 = arith.constant 0 : i32
    return %c0_i32, %c0_i32_0 : i32, i32
  }
  func.func @transform_3(%arg0: i32) -> (i32, i32) {
    %c0_i32 = arith.constant 0 : i32
    %c0_i32_0 = arith.constant 0 : i32
    %c0_i32_1 = arith.constant 0 : i32
    return %c0_i32, %c0_i32_0 : i32, i32
  }
  func.func @transform_4(%arg0: i32) -> (i32, i32, i32) {
    %c0_i32 = arith.constant 0 : i32
    %c0_i32_0 = arith.constant 0 : i32
    %c0_i32_1 = arith.constant 0 : i32
    %c0_i32_2 = arith.constant 0 : i32
    return %c0_i32, %c0_i32_0, %c0_i32_1 : i32, i32, i32
  }
  func.func @transform_5(%arg0: i32) -> (i32, i32) {
    %c0_i32 = arith.constant 0 : i32
    %c0_i32_0 = arith.constant 0 : i32
    %c0_i32_1 = arith.constant 0 : i32
    return %c0_i32, %c0_i32_0 : i32, i32
  }
  func.func @transform_6(%arg0: i32) -> (i32, i32) {
    %c0_i32 = arith.constant 0 : i32
    %c0_i32_0 = arith.constant 0 : i32
    %c0_i32_1 = arith.constant 0 : i32
    return %c0_i32, %c0_i32_0 : i32, i32
  }
  func.func @transform_7(%arg0: i32) -> (i32, i32, i32) {
    %c0_i32 = arith.constant 0 : i32
    %c0_i32_0 = arith.constant 0 : i32
    %c0_i32_1 = arith.constant 0 : i32
    return %arg0, %c0_i32, %c0_i32_0 : i32, i32, i32
  }
}

</mosaic_0001>

<bundles_post_ra>
// kernel: tpu_custom_call.1
= control target key start
LH: loop header
LB: loop body
LE: loop exit
PB: predicated region body
PF: predicated region fallthrough
CT: control target
= control target key end

     0   :  { %12 = vsyncpa [#allocation3], 0  ;;  %s2632_s0 = inlined_call_operand.vmem [shape: f32[4,8,32], index: 0, kind: input, shape index: {}]   ;;  %s2633_s1 = inlined_call_operand.vmem [shape: f32[32,32], index: 1, kind: input, shape index: {}]   ;;  %s2634_s2 = inlined_call_operand.hbm [shape: f32[8,128], index: 2, kind: input, shape index: {}]   ;;  %s2635_s3 = inlined_call_operand.vmem [shape: f32[32,128], index: 3, kind: input, shape index: {}]   ;;  %s2636_s4 = inlined_call_operand.hbm [shape: f32[4,8,32], index: 4, kind: input, shape index: {}]   ;;  %s2637_s5 = inlined_call_operand.hbm [shape: f32[32,64], index: 5, kind: input, shape index: {}]   ;;  %s2638_s6 = inlined_call_operand.vmem [shape: f32[64,32], index: 6, kind: input, shape index: {}]   ;;  %s2639_s7 = inlined_call_operand.hbm [shape: f32[4,8,32], index: 7, kind: output, shape index: {}]  }
   0x1   :  { %13 = vsyncpa [#allocation6], 0  ;;  %s36_s26 = sshll.u32 %s2636_s4, 4  ;;  %s37_s26 = int_to_ptr.hbm [resolvable:$true] %s36_s26 }
   0x2   :  { %14 = vsyncpa [#allocation4], 0  ;;  %s1859_s27 = smov [#allocation5]   ;;  %s24_s8 = sshll.u32 %s2634_s2, 4  ;;  %s25_s8 = int_to_ptr.hbm [resolvable:$true] %s24_s8 }
   0x3   :  { %s38_s28 = sshll.u32 %s1859_s27, 4  ;;  %s1860_s9 = smov 128   ;;  %s39_s28 = int_to_ptr.vmem [resolvable:$true] %s38_s28 }
   0x4   :  { %s1861_s10 = smov 8   ;;  %s1862_s11 = smov [#allocation2]  }
   0x5   :  { %44 = dma.hbm_to_vmem [thread:$0]  %s37_s26, 512, %s39_s28, [#allocation6], %s1860_s9, %s1860_s9, %s1861_s10  }
   0x6   :  { %s26_s12 = sshll.u32 %s1862_s11, 4  ;;  %s49_s14 = sshll.u32 %s2637_s5, 4  ;;  %s27_s12 = int_to_ptr.vmem [resolvable:$true] %s26_s12  ;;  %s50_s14 = int_to_ptr.hbm [resolvable:$true] %s49_s14 }
   0x7   :  { %29 = dma.hbm_to_vmem [thread:$0]  %s25_s8, 128, %s27_s12, [#allocation3]  }
   0x8   :  { %s1863_s15 = smov [#allocation7]  }
   0x9   :  { %s51_s16 = sshll.u32 %s1863_s15, 4  ;;  %s52_s16 = int_to_ptr.vmem [resolvable:$true] %s51_s16 }
   0xa   :  { %57 = dma.hbm_to_vmem [thread:$0]  %s50_s14, 512, %s52_s16, [#allocation6], %s1860_s9, %s1860_s9, %s1861_s10  }
   0xb   :  { %1853 = dma.done.wait [#allocation3], 128  }
   0xc   :  { %1854 = vsyncadd [#allocation3], 4294967168 }
   0xd   :  { %1855 = dma.done.wait [#allocation6], 1024  }
   0xe   :  { %1856 = vsyncadd [#allocation6], 4294966272  ;;  %vm77_vm0 = vcmask 261120   ;;  %v74_v0 = vld [vmem:[%s2632_s0 + $0x10] sm:$0xff]  ;;  %v72_v1 = vld [vmem:[%s2632_s0] sm:$0xff]  ;;  %v1864_v8 = vmov 32.0  }
   0xf   :  { %v84_v2 = vsel %vm77_vm0, %v74_v0, 0.0  ;;  %v78_v3 = vsel %vm77_vm0, %v72_v1, 0.0  ;;  %v75_v4 = vld [vmem:[%s2632_s0 + $0x18] sm:$0xff]  ;;  %v73_v5 = vld [vmem:[%s2632_s0 + $0x8] sm:$0xff]  ;;  %1670 = vrcp.f32 %v1864_v8  ;;  %v185_v36 = vld [vmem:[%s2635_s3 + $0x10] sm:$0xff]  ;;  %s1866_s8 = smov 120  }
  0x10   :  { %85 = vadd.xlane.f32.xlu1 %v84_v2  ;;  %79 = vadd.xlane.f32.xlu0 %v78_v3  ;;  %v87_v6 = vsel %vm77_vm0, %v75_v4, 0.0  ;;  %v81_v7 = vsel %vm77_vm0, %v73_v5, 0.0  ;;  %v186_v35 = vld [vmem:[%s2635_s3 + $0x18] sm:$0xff]  ;;  %v184_v37 = vld [vmem:[%s2635_s3 + $0x8] sm:$0xff]  ;;  %v183_v38 = vld [vmem:[%s2635_s3] sm:$0xff]  ;;  %s1865_s3 = smov 112  }
  0x11   :  { %212 = vmatpush.msra.mxu0 %v186_v35  ;;  %v76_v59 = vld [vmem:[#allocation2] sm:$0xff]  ;;  %s1867_s11 = smov 96   ;;  %s1868_s12 = smov 104   ;;  %vm265_vm14 = vcmask 64512  }
  0x12   :  { %v173_v2 = vperm.slane %v76_v59, 0  ;;  %s1869_s13 = smov 64  }
  0x13   :  { %213 = vmatpush.msra.mxu0 %v185_v36 }
  0x15   :  { %v1671_v9 = vpop.eup %1670  ;;  %214 = vmatpush.msra.mxu0 %v184_v37 }
  0x16   :  { %v91_v10 = vmul.f32 32.0, %v1671_v9  ;;  %vm95_vm1 = vweird.f32 %v1671_v9 }
  0x17   :  { %215 = vmatpush.msra.mxu0 %v183_v38 }
  0x18   :  { %88 = vadd.xlane.f32.xlu1 %v87_v6  ;;  %82 = vadd.xlane.f32.xlu0 %v81_v7  ;;  %v92_v11 = vsub.f32 1.0, %v91_v10  ;;  %v178_v6 = vperm.slane %v76_v59, 1 }
  0x1a   :  { %v93_v12 = vmul.f32 %v1671_v9, %v92_v11 }
  0x1c   :  { %v94_v13 = vadd.f32 %v1671_v9, %v93_v12 }
  0x1e   :  { %v1942_v14 = vsel %vm95_vm1, %v1671_v9, %v94_v13 }
  0x83   :  { %v86_v15 = vpop.xlane.xlu1 %85  ;;  %v80_v16 = vpop.xlane.xlu0 %79 }
  0x84   :  { %v99_v17 = vmul.f32 %v1942_v14, %v86_v15  ;;  %v97_v18 = vmul.f32 %v1942_v14, %v80_v16 }
  0x86   :  { %v1946_v19 = vsub.f32 %v74_v0, %v99_v17  ;;  %v1948_v20 = vsub.f32 %v72_v1, %v97_v18 }
  0x88   :  { %v107_v21 = vmul.f32 %v1946_v19, %v1946_v19  ;;  %v105_v22 = vmul.f32 %v1948_v20, %v1948_v20 }
  0x8a   :  { %v115_v23 = vsel %vm77_vm0, %v107_v21, 0.0  ;;  %v109_v24 = vsel %vm77_vm0, %v105_v22, 0.0 }
  0x8b   :  { %v89_v25 = vpop.xlane.xlu1 %88  ;;  %116 = vadd.xlane.f32.xlu0 %v115_v23  ;;  %110 = vadd.xlane.f32.xlu2 %v109_v24  ;;  %v83_v26 = vpop.xlane.xlu0 %82 }
  0x8c   :  { %v100_v27 = vmul.f32 %v1942_v14, %v89_v25  ;;  %v98_v28 = vmul.f32 %v1942_v14, %v83_v26 }
  0x8e   :  { %v1958_v29 = vsub.f32 %v75_v4, %v100_v27  ;;  %v1960_v30 = vsub.f32 %v73_v5, %v98_v28 }
  0x90   :  { %v108_v31 = vmul.f32 %v1958_v29, %v1958_v29  ;;  %v106_v32 = vmul.f32 %v1960_v30, %v1960_v30 }
  0x92   :  { %v118_v33 = vsel %vm77_vm0, %v108_v31, 0.0  ;;  %v112_v34 = vsel %vm77_vm0, %v106_v32, 0.0 }
  0x93   :  { %119 = vadd.xlane.f32.xlu1 %v118_v33  ;;  %113 = vadd.xlane.f32.xlu2 %v112_v34  ;;  %v187_v34 = vperm.slane %v76_v59, 2 }
  0xfe   :  { %v111_v39 = vpop.xlane.xlu2 %110  ;;  %v117_v40 = vpop.xlane.xlu0 %116 }
  0xff   :  { %v121_v41 = vmul.f32 %v111_v39, %v1942_v14  ;;  %v123_v42 = vmul.f32 %v117_v40, %v1942_v14 }
 0x101   :  { %v125_v43 = vadd.f32 1e-05, %v121_v41  ;;  %v127_v44 = vadd.f32 1e-05, %v123_v42 }
 0x103   :  { %1672 = vrsqrt.f32 %v125_v43  ;;  %vm135_vm3 = vweird.f32 %v125_v43  ;;  %vm155_vm5 = vweird.f32 %v127_v44 }
 0x104   :  { %1674 = vrsqrt.f32 %v127_v44 }
 0x106   :  { %v120_v45 = vpop.xlane.xlu1 %119  ;;  %v114_v46 = vpop.xlane.xlu2 %113 }
 0x107   :  { %v124_v47 = vmul.f32 %v120_v45, %v1942_v14  ;;  %v122_v48 = vmul.f32 %v114_v46, %v1942_v14 }
 0x109   :  { %v1673_v49 = vpop.eup %1672  ;;  %v128_v50 = vadd.f32 1e-05, %v124_v47  ;;  %v126_v51 = vadd.f32 1e-05, %v122_v48 }
 0x10a   :  { %v1675_v52 = vpop.eup %1674  ;;  %v130_v53 = vmul.f32 %v1673_v49, %v125_v43  ;;  %vm136_vm2 = vweird.f32 %v1673_v49 }
 0x10b   :  { %v150_v54 = vmul.f32 %v1675_v52, %v127_v44  ;;  %1676 = vrsqrt.f32 %v128_v50  ;;  %vm137_vm4 = vmor %vm135_vm3, %vm136_vm2  ;;  %vm156_vm6 = vweird.f32 %v1675_v52  ;;  %vm145_vm9 = vweird.f32 %v126_v51 }
 0x10c   :  { %v131_v55 = vmul.f32 %v1673_v49, %v130_v53  ;;  %1678 = vrsqrt.f32 %v126_v51  ;;  %vm157_vm8 = vmor %vm155_vm5, %vm156_vm6  ;;  %vm165_vm11 = vweird.f32 %v128_v50 }
 0x10d   :  { %v151_v57 = vmul.f32 %v1675_v52, %v150_v54 }
 0x10e   :  { %v132_v56 = vmul.f32 0.5, %v131_v55 }
 0x10f   :  { %v152_v63 = vmul.f32 0.5, %v151_v57 }
 0x110   :  { %v133_v58 = vsub.f32 1.5, %v132_v56 }
 0x111   :  { %v1677_v60 = vpop.eup %1676  ;;  %v153_v7 = vsub.f32 1.5, %v152_v63 }
 0x112   :  { %v1679_v61 = vpop.eup %1678  ;;  %v134_v62 = vmul.f32 %v1673_v49, %v133_v58  ;;  %v160_v0 = vmul.f32 %v1677_v60, %v128_v50  ;;  %vm166_vm12 = vweird.f32 %v1677_v60 }
 0x113   :  { %v140_v1 = vmul.f32 %v1679_v61, %v126_v51  ;;  %vm146_vm7 = vweird.f32 %v1679_v61  ;;  %v154_v13 = vmul.f32 %v1675_v52, %v153_v7  ;;  %vm167_vm13 = vmor %vm165_vm11, %vm166_vm12 }
 0x114   :  { %v138_v3 = vsel %vm137_vm4, %v1673_v49, %v134_v62  ;;  %v161_v8 = vmul.f32 %v1677_v60, %v160_v0  ;;  %vm147_vm10 = vmor %vm145_vm9, %vm146_vm7 }
 0x115   :  { %v141_v4 = vmul.f32 %v1679_v61, %v140_v1  ;;  %v169_v5 = vmul.f32 %v138_v3, %v1948_v20  ;;  %v158_v20 = vsel %vm157_vm8, %v1675_v52, %v154_v13 }
 0x116   :  { %v162_v15 = vmul.f32 0.5, %v161_v8  ;;  %v171_v24 = vmul.f32 %v158_v20, %v1946_v19 }
 0x117   :  { %v142_v9 = vmul.f32 0.5, %v141_v4  ;;  %v174_v10 = vmul.f32 %v173_v2, %v169_v5 }
 0x118   :  { %v163_v21 = vsub.f32 1.5, %v162_v15  ;;  %v176_v26 = vmul.f32 %v173_v2, %v171_v24 }
 0x119   :  { %v143_v11 = vsub.f32 1.5, %v142_v9  ;;  %v179_v12 = vadd.f32 %v178_v6, %v174_v10 }
 0x11a   :  { %v164_v25 = vmul.f32 %v1677_v60, %v163_v21  ;;  %v181_v28 = vadd.f32 %v178_v6, %v176_v26 }
 0x11b   :  { %v144_v16 = vmul.f32 %v1679_v61, %v143_v11  ;;  %1534 = vmatmul.msk.f32.vlgmr.msra.gmra.mxu0 %vm77_vm0, %v179_v12 }
 0x11c   :  { %v168_v27 = vsel %vm167_vm13, %v1677_v60, %v164_v25 }
 0x11d   :  { %v148_v17 = vsel %vm147_vm10, %v1679_v61, %v144_v16  ;;  %v172_v31 = vmul.f32 %v168_v27, %v1958_v29 }
 0x11e   :  { %v170_v18 = vmul.f32 %v148_v17, %v1960_v30 }
 0x11f   :  { %v177_v30 = vmul.f32 %v173_v2, %v172_v31 }
 0x120   :  { %v175_v22 = vmul.f32 %v173_v2, %v170_v18 }
 0x121   :  { %v182_v32 = vadd.f32 %v178_v6, %v177_v30 }
 0x122   :  { %v180_v23 = vadd.f32 %v178_v6, %v175_v22  ;;  %v486_v22 = vld [vmem:[%s2633_s1] sm:$0xff] }
 0x124   :  { %1535 = vmatmul.msk.f32.gmra.mxu0 %vm77_vm0, %v180_v23 }
 0x12c   :  { %1536 = vmatmul.msk.f32.gmra.mxu0 %vm77_vm0, %v181_v28  ;;  %v487_v28 = vld [vmem:[%s2633_s1 + $0x8] sm:$0xff] }
 0x134   :  { %1537 = vmatmul.msk.f32.gmra.mxu0 %vm77_vm0, %v182_v32 }
 0x198   :  { %v217_v33 = vpop.f32.mrf.mxu0 }
 0x199   :  { %v2001_v39 = vadd.f32 %v217_v33, %v187_v34 }
 0x1a1   :  { %v220_v35 = vpop.f32.mrf.mxu0 }
 0x1a2   :  { %v1992_v36 = vadd.f32 %v220_v35, %v187_v34 }
 0x1a4   :  { %243 = vrot.lane.b32.xlu0 %v1992_v36, %s1865_s3 }
 0x1a9   :  { %v223_v19 = vpop.f32.mrf.mxu0 }
 0x1aa   :  { %v1995_v37 = vadd.f32 %v223_v19, %v187_v34 }
 0x1ac   :  { %237 = vrot.lane.b32.xlu2 %v1995_v37, %s1866_s8  ;;  %245 = vrot.lane.b32.xlu1 %v1995_v37, %s1865_s3 }
 0x1b1   :  { %v226_v29 = vpop.f32.mrf.mxu0 }
 0x1b2   :  { %v1999_v38 = vadd.f32 %v226_v29, %v187_v34  ;;  %v2135_v34 = vld [vmem:[%s2633_s1 + $0x10] sm:$0xff] }
 0x1b4   :  { %239 = vrot.lane.b32.xlu0 %v1999_v38, %s1866_s8  ;;  %247 = vrot.lane.b32.xlu2 %v1999_v38, %s1865_s3 }
 0x1b5   :  { %241 = vrot.lane.b32.xlu1 %v2001_v39, %s1865_s3 }
 0x1bc   :  { %263 = vrot.lane.b32.xlu0 %v1999_v38, %s1867_s11  ;;  %235 = vrot.lane.b32.xlu2 %v1992_v36, %s1866_s8 }
 0x1bd   :  { %261 = vrot.lane.b32.xlu1 %v1995_v37, %s1867_s11 }
 0x1c4   :  { %255 = vrot.lane.b32.xlu0 %v1999_v38, %s1868_s12  ;;  %233 = vrot.lane.b32.xlu2 %v2001_v39, %s1866_s8 }
 0x1c5   :  { %253 = vrot.lane.b32.xlu1 %v1995_v37, %s1868_s12 }
 0x1cc   :  { %257 = vrot.lane.b32.xlu0 %v2001_v39, %s1867_s11  ;;  %259 = vrot.lane.b32.xlu2 %v1992_v36, %s1867_s11 }
 0x1cd   :  { %249 = vrot.lane.b32.xlu1 %v2001_v39, %s1868_s12 }
 0x1d4   :  { %251 = vrot.lane.b32.xlu2 %v1992_v36, %s1868_s12 }
 0x206   :  { %v2020_v40 = vpop.permute.xlu2 %237 }
 0x20e   :  { %v2022_v41 = vpop.permute.xlu2 %247 }
 0x20f   :  { %370 = vrot.lane.b32.xlu0 %v2022_v41, %s1867_s11 }
 0x216   :  { %v2028_v42 = vpop.permute.xlu0 %243  ;;  %v2034_v44 = vpop.permute.xlu2 %235 }
 0x217   :  { %315 = vrot.lane.b32.xlu0 %v2020_v40, %s1867_s11  ;;  %v1645_v59 = vpack.i.bf16 %v2034_v44, %v2022_v41 }
 0x21e   :  { %v2030_v43 = vpop.permute.xlu1 %245  ;;  %v234_v47 = vpop.permute.xlu2 %233 }
 0x21f   :  { %368 = vrot.lane.b32.xlu1 %v2030_v43, %s1867_s11  ;;  %v1630_v53 = vpack.i.bf16 %v234_v47, %v2030_v43 }
 0x226   :  { %v2036_v45 = vpop.permute.xlu0 %239  ;;  %v260_v50 = vpop.permute.xlu2 %259 }
 0x227   :  { %v242_v46 = vpop.permute.xlu1 %241  ;;  %313 = vrot.lane.b32.xlu1 %v2034_v44, %s1867_s11  ;;  %317 = vrot.lane.b32.xlu2 %v2036_v45, %s1867_s11  ;;  %v1640_v58 = vpack.i.bf16 %v2020_v40, %v2036_v45 }
 0x228   :  { %364 = vrot.lane.b32.xlu0 %v242_v46, %s1867_s11  ;;  %v1635_v57 = vpack.i.bf16 %v242_v46, %v2028_v42 }
 0x22e   :  { %v264_v48 = vpop.permute.xlu0 %263  ;;  %v2061_v54 = vpop.permute.xlu2 %251 }
 0x22f   :  { %v262_v49 = vpop.permute.xlu1 %261  ;;  %366 = vrot.lane.b32.xlu2 %v2028_v42, %s1867_s11  ;;  %1538 = vmatpush.xpose.msk.msra.mxu1 %vm265_vm14, %v264_v48 }
 0x230   :  { %1610 = vmatpush.xpose.msk.msra.mxu3 %vm265_vm14, %v264_v48 }
 0x233   :  { %1539 = vmatpush.xpose.msk.msra.mxu1 %vm265_vm14, %v262_v49 }
 0x234   :  { %1611 = vmatpush.xpose.msk.msra.mxu3 %vm265_vm14, %v262_v49 }
 0x236   :  { %v2049_v51 = vpop.permute.xlu0 %255 }
 0x237   :  { %v2051_v52 = vpop.permute.xlu1 %253  ;;  %311 = vrot.lane.b32.xlu2 %v234_v47, %s1867_s11  ;;  %1540 = vmatpush.xpose.msk.msra.mxu1 %vm265_vm14, %v260_v50 }
 0x238   :  { %421 = vrot.lane.b32.xlu0 %v2051_v52, %s1867_s11  ;;  %1612 = vmatpush.xpose.msk.msra.mxu3 %vm265_vm14, %v260_v50 }
 0x239   :  { %423 = vrot.lane.b32.xlu1 %v2049_v51, %s1867_s11 }
 0x23e   :  { %v258_v55 = vpop.permute.xlu0 %257 }
 0x23f   :  { %v2063_v56 = vpop.permute.xlu1 %249  ;;  %419 = vrot.lane.b32.xlu2 %v2061_v54, %s1867_s11  ;;  %1541 = vmatpush.xpose.msk.msra.mxu1 %vm265_vm14, %v258_v55 }
 0x240   :  { %1631 = vrot.lane.b32.xlu0 %v1630_v53, %s1869_s13  ;;  %1613 = vmatpush.xpose.msk.msra.mxu3 %vm265_vm14, %v258_v55 }
 0x241   :  { %417 = vrot.lane.b32.xlu1 %v2063_v56, %s1867_s11 }
 0x242   :  { %1542 = vmatmul.msk.f32.vlgmr.msra.gmra.mxu1 %vm265_vm14, %v2001_v39 }
 0x243   :  { %1543 = vmatmul.msk.f32.vlgmr.msra.gmra.mxu3 %vm265_vm14, %v1992_v36 }
 0x247   :  { %1636 = vrot.lane.b32.xlu2 %v1635_v57, %s1869_s13 }
 0x248   :  { %1641 = vrot.lane.b32.xlu0 %v1640_v58, %s1869_s13 }
 0x24b   :  { %1544 = vmatmul.msk.f32.gmra.mxu3 %vm265_vm14, %v1995_v37 }
 0x24f   :  { %1646 = vrot.lane.b32.xlu2 %v1645_v59, %s1869_s13 }
 0x253   :  { %1545 = vmatmul.msk.f32.gmra.mxu3 %vm265_vm14, %v1999_v38 }
 0x281   :  { %v318_v60 = vpop.permute.xlu2 %317  ;;  %v371_v61 = vpop.permute.xlu0 %370 }
 0x282   :  { %1546 = vmatpush.xpose.msk.msrb.mxu1 %vm265_vm14, %v318_v60  ;;  %1614 = vmatpush.xpose.msk.msra.mxu2 %vm265_vm14, %v318_v60 }
 0x283   :  { %1554 = vmatpush.xpose.msk.msrb.mxu3 %vm265_vm14, %v371_v61 }
 0x289   :  { %v367_v62 = vpop.permute.xlu2 %366  ;;  %v316_v63 = vpop.permute.xlu0 %315 }
 0x28a   :  { %1547 = vmatpush.xpose.msk.msrb.mxu1 %vm265_vm14, %v316_v63  ;;  %1615 = vmatpush.xpose.msk.msra.mxu2 %vm265_vm14, %v316_v63 }
 0x291   :  { %v369_v0 = vpop.permute.xlu1 %368  ;;  %v312_v1 = vpop.permute.xlu2 %311 }
 0x292   :  { %1555 = vmatpush.xpose.msk.msrb.mxu3 %vm265_vm14, %v369_v0 }
 0x296   :  { %1556 = vmatpush.xpose.msk.msrb.mxu3 %vm265_vm14, %v367_v62 }
 0x299   :  { %v314_v2 = vpop.permute.xlu1 %313  ;;  %v420_v3 = vpop.permute.xlu2 %419 }
 0x29a   :  { %v365_v4 = vpop.permute.xlu0 %364  ;;  %1548 = vmatpush.xpose.msk.msrb.mxu1 %vm265_vm14, %v314_v2  ;;  %1616 = vmatpush.xpose.msk.msra.mxu2 %vm265_vm14, %v314_v2 }
 0x29b   :  { %1557 = vmatpush.xpose.msk.msrb.mxu3 %vm265_vm14, %v365_v4 }
 0x29e   :  { %1558 = vmatmul.msk.f32.vlgmr.msrb.gmra.mxu3 %vm265_vm14, %v242_v46  ;;  %1549 = vmatpush.xpose.msk.msrb.mxu1 %vm265_vm14, %v312_v1 }
 0x29f   :  { %1617 = vmatpush.xpose.msk.msra.mxu2 %vm265_vm14, %v312_v1 }
 0x2a1   :  { %v1637_v5 = vpop.permute.xlu2 %1636  ;;  %1550 = vmatmul.msk.f32.vlgmr.msrb.gmra.mxu1 %vm265_vm14, %v234_v47 }
 0x2a2   :  { %1551 = vmatmul.msk.f32.vlgmr.msra.gmra.mxu2 %vm265_vm14, %v2034_v44  ;;  %v1638_v12 = vunpack.i.l.bf16 %v1637_v5  ;;  %v1639_v13 = vunpack.i.h.bf16 %v1637_v5 }
 0x2a6   :  { %1559 = vmatmul.msk.f32.gmra.mxu3 %vm265_vm14, %v2028_v42 }
 0x2a9   :  { %v1647_v6 = vpop.permute.xlu2 %1646 }
 0x2aa   :  { %v1648_v7 = vunpack.i.l.bf16 %v1647_v6  ;;  %1552 = vmatmul.msk.f32.gmra.mxu2 %vm265_vm14, %v2020_v40  ;;  %v422_v8 = vpop.permute.xlu0 %421  ;;  %v1649_v21 = vunpack.i.h.bf16 %v1647_v6 }
 0x2ab   :  { %v424_v9 = vpop.permute.xlu1 %423 }
 0x2ac   :  { %1562 = vmatpush.xpose.msk.msrb.mxu0 %vm265_vm14, %v424_v9  ;;  %1032 = vmatpush.msra.mxu3 %v1648_v7 }
 0x2ae   :  { %1560 = vmatmul.msk.f32.gmra.mxu3 %vm265_vm14, %v2030_v43 }
 0x2b0   :  { %1563 = vmatpush.xpose.msk.msrb.mxu0 %vm265_vm14, %v422_v8 }
 0x2b2   :  { %1553 = vmatmul.msk.f32.gmra.mxu2 %vm265_vm14, %v2036_v45  ;;  %v1632_v10 = vpop.permute.xlu0 %1631 }
 0x2b3   :  { %v1633_v11 = vunpack.i.l.bf16 %v1632_v10  ;;  %v418_v15 = vpop.permute.xlu1 %417  ;;  %v1634_v24 = vunpack.i.h.bf16 %v1632_v10 }
 0x2b4   :  { %1564 = vmatpush.xpose.msk.msrb.mxu0 %vm265_vm14, %v420_v3 }
 0x2b5   :  { %1033 = vmatpush.msra.mxu3 %v1633_v11 }
 0x2b6   :  { %1561 = vmatmul.msk.f32.gmra.mxu3 %vm265_vm14, %v2022_v41  ;;  %v2147_v41 = vld [vmem:[%s2633_s1 + $0x18] sm:$0xff]  ;;  %s1520_s1 = sshll.u32 %s2639_s7, 4  ;;  %s1521_s1 = int_to_ptr.hbm [resolvable:$true] %s1520_s1 }
 0x2b7   :  { %1034 = vmatpush.msra.mxu3 %v1638_v12 }
 0x2b8   :  { %1565 = vmatpush.xpose.msk.msrb.mxu0 %vm265_vm14, %v418_v15 }
 0x2b9   :  { %1035 = vmatpush.msra.mxu3 %v1639_v13 }
 0x2ba   :  { %v1642_v16 = vpop.permute.xlu0 %1641 }
 0x2bb   :  { %1566 = vmatmul.msk.f32.vlgmr.msrb.gmra.mxu0 %vm265_vm14, %v2063_v56  ;;  %v1643_v17 = vunpack.i.l.bf16 %v1642_v16  ;;  %v1644_v18 = vunpack.i.h.bf16 %v1642_v16 }
 0x2bd   :  { %979 = vmatpush.msrb.mxu2 %v1643_v17 }
 0x2bf   :  { %980 = vmatpush.msrb.mxu2 %v1644_v18  ;;  %v299_v20 = vpop.f32.mrf.mxu1 }
 0x2c0   :  { %v470_v23 = vmul.f32 0.35355338, %v299_v20 }
 0x2c1   :  { %981 = vmatpush.msrb.mxu2 %v1649_v21 }
 0x2c2   :  { %v490_v25 = vadd.f32 %v486_v22, %v470_v23 }
 0x2c3   :  { %1567 = vmatmul.msk.f32.gmra.mxu0 %vm265_vm14, %v2061_v54  ;;  %982 = vmatpush.msrb.mxu2 %v1634_v24 }
 0x2c4   :  { %v506_v26 = vsel %vm77_vm0, %v490_v25, -inf }
 0x2c5   :  { %507 = vmax.xlane.f32.xlu2 %v506_v26 }
 0x2c6   :  { %v302_v27 = vpop.f32.mrf.mxu3 }
 0x2c7   :  { %v471_v31 = vmul.f32 0.35355338, %v302_v27 }
 0x2c9   :  { %v491_v30 = vadd.f32 %v487_v28, %v471_v31 }
 0x2cb   :  { %1568 = vmatmul.msk.f32.gmra.mxu0 %vm265_vm14, %v2051_v52  ;;  %v509_v32 = vsel %vm77_vm0, %v491_v30, -inf }
 0x2cc   :  { %510 = vmax.xlane.f32.xlu1 %v509_v32 }
 0x2ce   :  { %v305_v33 = vpop.f32.mrf.mxu3 }
 0x2cf   :  { %v472_v35 = vmul.f32 0.35355338, %v305_v33 }
 0x2d1   :  { %v2138_v19 = vadd.f32 %v2135_v34, %v472_v35 }
 0x2d3   :  { %1569 = vmatmul.msk.f32.gmra.mxu0 %vm265_vm14, %v2049_v51  ;;  %v512_v29 = vsel %vm77_vm0, %v2138_v19, -inf }
 0x2d4   :  { %513 = vmax.xlane.f32.xlu0 %v512_v29 }
 0x2d6   :  { %v308_v40 = vpop.f32.mrf.mxu3 }
 0x2d7   :  { %v473_v42 = vmul.f32 0.35355338, %v308_v40 }
 0x2d9   :  { %v2150_v43 = vadd.f32 %v2147_v41, %v473_v42 }
 0x2db   :  { %v515_v44 = vsel %vm77_vm0, %v2150_v43, -inf }
 0x2dc   :  { %516 = vmax.xlane.f32.xlu1 %v515_v44 }
 0x31e   :  { %v352_v45 = vpop.f32.mrf.mxu1 }
 0x31f   :  { %v474_v46 = vmul.f32 0.35355338, %v352_v45 }
 0x321   :  { %v405_v47 = vpop.f32.mrf.mxu3  ;;  %v2154_v48 = vadd.f32 %v486_v22, %v474_v46 }
 0x322   :  { %v478_v49 = vmul.f32 0.35355338, %v405_v47 }
 0x323   :  { %v518_v50 = vsel %vm77_vm0, %v2154_v48, -inf }
 0x324   :  { %519 = vmax.xlane.f32.xlu0 %v518_v50  ;;  %v2158_v53 = vadd.f32 %v486_v22, %v478_v49 }
 0x325   :  { %v355_v55 = vpop.f32.mrf.mxu2 }
 0x326   :  { %v475_v57 = vmul.f32 0.35355338, %v355_v55  ;;  %v530_v58 = vsel %vm77_vm0, %v2158_v53, -inf }
 0x327   :  { %531 = vmax.xlane.f32.xlu2 %v530_v58 }
 0x328   :  { %v2162_v59 = vadd.f32 %v487_v28, %v475_v57  ;;  %v1650_v57 = vpack.i.bf16 %v1995_v37, %v1999_v38 }
 0x329   :  { %v408_v61 = vpop.f32.mrf.mxu3 }
 0x32a   :  { %v521_v60 = vsel %vm77_vm0, %v2162_v59, -inf  ;;  %v479_v4 = vmul.f32 0.35355338, %v408_v61 }
 0x32b   :  { %522 = vmax.xlane.f32.xlu1 %v521_v60 }
 0x32c   :  { %v2170_v12 = vadd.f32 %v487_v28, %v479_v4 }
 0x32d   :  { %v358_v8 = vpop.f32.mrf.mxu2 }
 0x32e   :  { %v476_v17 = vmul.f32 0.35355338, %v358_v8  ;;  %v533_v20 = vsel %vm77_vm0, %v2170_v12, -inf }
 0x330   :  { %v2183_v23 = vadd.f32 %v2135_v34, %v476_v17 }
 0x331   :  { %v411_v6 = vpop.f32.mrf.mxu3 }
 0x332   :  { %v524_v32 = vsel %vm77_vm0, %v2183_v23, -inf  ;;  %v480_v33 = vmul.f32 0.35355338, %v411_v6 }
 0x334   :  { %v2203_v44 = vadd.f32 %v2135_v34, %v480_v33 }
 0x335   :  { %v361_v27 = vpop.f32.mrf.mxu2 }
 0x336   :  { %v477_v35 = vmul.f32 0.35355338, %v361_v27  ;;  %v536_v50 = vsel %vm77_vm0, %v2203_v44, -inf }
 0x338   :  { %v458_v62 = vpop.f32.mrf.mxu0  ;;  %v508_v63 = vpop.xlane.xlu2 %507  ;;  %v2200_v42 = vadd.f32 %v2147_v41, %v477_v35 }
 0x339   :  { %v482_v0 = vmul.f32 0.35355338, %v458_v62  ;;  %v554_v1 = vsub.f32 %v490_v25, %v508_v63  ;;  %v414_v24 = vpop.f32.mrf.mxu3 }
 0x33a   :  { %v527_v49 = vsel %vm77_vm0, %v2200_v42, -inf }
 0x33b   :  { %v570_v2 = vmul.f32 1.442695, %v554_v1  ;;  %v2166_v3 = vadd.f32 %v486_v22, %v482_v0 }
 0x33d   :  { %1680 = vpow2.f32 %v570_v2  ;;  %v542_v5 = vsel %vm77_vm0, %v2166_v3, -inf }
 0x33e   :  { %543 = vmax.xlane.f32.xlu0 %v542_v5 }
 0x33f   :  { %v511_v7 = vpop.xlane.xlu1 %510 }
 0x340   :  { %v555_v9 = vsub.f32 %v491_v30, %v511_v7  ;;  %v461_v10 = vpop.f32.mrf.mxu0  ;;  %v481_v30 = vmul.f32 0.35355338, %v414_v24 }
 0x341   :  { %v483_v11 = vmul.f32 0.35355338, %v461_v10 }
 0x342   :  { %v572_v13 = vmul.f32 1.442695, %v555_v9  ;;  %v2197_v40 = vadd.f32 %v2147_v41, %v481_v30 }
 0x343   :  { %v2172_v15 = vpop.eup %1680  ;;  %v2174_v16 = vadd.f32 %v487_v28, %v483_v11 }
 0x344   :  { %1682 = vpow2.f32 %v572_v13  ;;  %v602_v18 = vsel %vm77_vm0, %v2172_v15, 0.0  ;;  %v539_v46 = vsel %vm77_vm0, %v2197_v40, -inf }
 0x345   :  { %v545_v21 = vsel %vm77_vm0, %v2174_v16, -inf  ;;  %603 = vadd.xlane.f32.xlu1 %v602_v18 }
 0x346   :  { %534 = vmax.xlane.f32.xlu0 %v533_v20  ;;  %546 = vmax.xlane.f32.xlu2 %v545_v21 }
 0x347   :  { %v514_v58 = vpop.xlane.xlu0 %513 }
 0x348   :  { %v464_v22 = vpop.f32.mrf.mxu0  ;;  %v556_v1 = vsub.f32 %v2138_v19, %v514_v58 }
 0x349   :  { %v484_v25 = vmul.f32 0.35355338, %v464_v22 }
 0x34a   :  { %v2185_v26 = vpop.eup %1682  ;;  %v574_v38 = vmul.f32 1.442695, %v556_v1 }
 0x34b   :  { %v605_v28 = vsel %vm77_vm0, %v2185_v26, 0.0  ;;  %v2190_v31 = vadd.f32 %v2135_v34, %v484_v25 }
 0x34d   :  { %v548_v29 = vsel %vm77_vm0, %v2190_v31, -inf  ;;  %525 = vmax.xlane.f32.xlu1 %v524_v32 }
 0x34e   :  { %606 = vadd.xlane.f32.xlu0 %v605_v28  ;;  %549 = vmax.xlane.f32.xlu2 %v548_v29 }
 0x34f   :  { %v2219_v60 = vpop.xlane.xlu1 %516 }
 0x350   :  { %v467_v45 = vpop.f32.mrf.mxu0 }
 0x351   :  { %v485_v47 = vmul.f32 0.35355338, %v467_v45 }
 0x353   :  { %v2212_v55 = vadd.f32 %v2147_v41, %v485_v47 }
 0x355   :  { %540 = vmax.xlane.f32.xlu1 %v539_v46  ;;  %v551_v34 = vsel %vm77_vm0, %v2212_v55, -inf }
 0x356   :  { %528 = vmax.xlane.f32.xlu0 %v527_v49  ;;  %537 = vmax.xlane.f32.xlu2 %v536_v50 }
 0x35e   :  { %552 = vmax.xlane.f32.xlu0 %v551_v34 }
 0x36e   :  { %1651 = vrot.lane.b32.xlu1 %v1650_v57, %s1869_s13 }
 0x397   :  { %v520_v61 = vpop.xlane.xlu0 %519 }
 0x398   :  { %v558_v62 = vsub.f32 %v2154_v48, %v520_v61 }
 0x39a   :  { %v578_v63 = vmul.f32 1.442695, %v558_v62 }
 0x39c   :  { %1684 = vpow2.f32 %v578_v63 }
 0x39e   :  { %v523_v0 = vpop.xlane.xlu1 %522 }
 0x39f   :  { %v559_v41 = vsub.f32 %v2162_v59, %v523_v0  ;;  %v532_v59 = vpop.xlane.xlu2 %531  ;;  %v557_v0 = vsub.f32 %v2150_v43, %v2219_v60  ;;  %v1665_v60 = vpack.i.bf16 %v2063_v56, %v2061_v54 }
 0x3a0   :  { %v562_v9 = vsub.f32 %v2158_v53, %v532_v59 }
 0x3a1   :  { %v580_v2 = vmul.f32 1.442695, %v559_v41 }
 0x3a2   :  { %v2224_v4 = vpop.eup %1684  ;;  %v586_v11 = vmul.f32 1.442695, %v562_v9 }
 0x3a3   :  { %1686 = vpow2.f32 %v580_v2  ;;  %v614_v37 = vsel %vm77_vm0, %v2224_v4, 0.0  ;;  %v576_v2 = vmul.f32 1.442695, %v557_v0 }
 0x3a4   :  { %615 = vadd.xlane.f32.xlu2 %v614_v37  ;;  %1688 = vpow2.f32 %v574_v38 }
 0x3a9   :  { %v2228_v5 = vpop.eup %1686 }
 0x3aa   :  { %v617_v48 = vsel %vm77_vm0, %v2228_v5, 0.0  ;;  %v2232_v6 = vpop.eup %1688 }
 0x3ab   :  { %618 = vadd.xlane.f32.xlu0 %v617_v48  ;;  %v608_v8 = vsel %vm77_vm0, %v2232_v6, 0.0 }
 0x3b1   :  { %v544_v19 = vpop.xlane.xlu0 %543 }
 0x3b2   :  { %v566_v7 = vsub.f32 %v2166_v3, %v544_v19  ;;  %v1655_v19 = vpack.i.bf16 %v2049_v51, %v1992_v36 }
 0x3b3   :  { %609 = vadd.xlane.f32.xlu0 %v608_v8 }
 0x3b4   :  { %v594_v10 = vmul.f32 1.442695, %v566_v7 }
 0x3b6   :  { %1690 = vpow2.f32 %v594_v10 }
 0x3b7   :  { %1692 = vpow2.f32 %v586_v11 }
 0x3b8   :  { %v2238_v13 = vpop.xlane.xlu1 %603 }
 0x3b9   :  { %v547_v17 = vpop.xlane.xlu2 %546  ;;  %v535_v18 = vpop.xlane.xlu0 %534  ;;  %vm655_vm9 = vweird.f32 %v2238_v13 }
 0x3ba   :  { %v567_v20 = vsub.f32 %v2174_v16, %v547_v17  ;;  %v563_v3 = vsub.f32 %v2170_v12, %v535_v18  ;;  %v1660_v12 = vpack.i.bf16 %v2051_v52, %v2001_v39 }
 0x3bc   :  { %v2241_v21 = vpop.eup %1690  ;;  %v596_v22 = vmul.f32 1.442695, %v567_v20  ;;  %v588_v53 = vmul.f32 1.442695, %v563_v3 }
 0x3bd   :  { %v638_v24 = vsel %vm77_vm0, %v2241_v21, 0.0  ;;  %v2249_v32 = vpop.eup %1692 }
 0x3be   :  { %1694 = vpow2.f32 %v596_v22  ;;  %639 = vadd.xlane.f32.xlu1 %v638_v24  ;;  %v626_v29 = vsel %vm77_vm0, %v2249_v32, 0.0 }
 0x3bf   :  { %1696 = vpow2.f32 %v588_v53 }
 0x3c0   :  { %v526_v25 = vpop.xlane.xlu1 %525 }
 0x3c1   :  { %v550_v27 = vpop.xlane.xlu2 %549  ;;  %v2246_v28 = vpop.xlane.xlu0 %606  ;;  %v560_v30 = vsub.f32 %v2183_v23, %v526_v25 }
 0x3c2   :  { %v568_v1 = vsub.f32 %v2190_v31, %v550_v27  ;;  %vm670_vm12 = vweird.f32 %v2246_v28 }
 0x3c3   :  { %v582_v16 = vmul.f32 1.442695, %v560_v30 }
 0x3c4   :  { %v2251_v33 = vpop.eup %1694  ;;  %v598_v48 = vmul.f32 1.442695, %v568_v1 }
 0x3c5   :  { %1698 = vpow2.f32 %v582_v16  ;;  %v641_v35 = vsel %vm77_vm0, %v2251_v33, 0.0  ;;  %v2260_v46 = vpop.eup %1696 }
 0x3c6   :  { %642 = vadd.xlane.f32.xlu2 %v641_v35  ;;  %627 = vadd.xlane.f32.xlu1 %v626_v29  ;;  %v629_v34 = vsel %vm77_vm0, %v2260_v46, 0.0 }
 0x3c7   :  { %1661 = vrot.lane.b32.xlu0 %v1660_v12, %s1869_s13 }
 0x3c8   :  { %v541_v58 = vpop.xlane.xlu1 %540 }
 0x3c9   :  { %v538_v23 = vpop.xlane.xlu2 %537  ;;  %v529_v45 = vpop.xlane.xlu0 %528 }
 0x3ca   :  { %v564_v47 = vsub.f32 %v2203_v44, %v538_v23  ;;  %v561_v52 = vsub.f32 %v2200_v42, %v529_v45  ;;  %v565_v44 = vsub.f32 %v2197_v40, %v541_v58 }
 0x3cb   :  { %v2263_v49 = vpop.eup %1698 }
 0x3cc   :  { %v590_v39 = vmul.f32 1.442695, %v564_v47  ;;  %v620_v50 = vsel %vm77_vm0, %v2263_v49, 0.0  ;;  %v584_v57 = vmul.f32 1.442695, %v561_v52 }
 0x3cd   :  { %v592_v42 = vmul.f32 1.442695, %v565_v44 }
 0x3ce   :  { %1700 = vpow2.f32 %v590_v39  ;;  %630 = vadd.xlane.f32.xlu2 %v629_v34  ;;  %621 = vadd.xlane.f32.xlu1 %v620_v50 }
 0x3cf   :  { %1702 = vpow2.f32 %v584_v57 }
 0x3d0   :  { %1704 = vpow2.f32 %v592_v42 }
 0x3d1   :  { %1706 = vpow2.f32 %v576_v2  ;;  %v553_v51 = vpop.xlane.xlu0 %552 }
 0x3d2   :  { %1708 = vpow2.f32 %v598_v48  ;;  %v569_v9 = vsub.f32 %v2212_v55, %v553_v51 }
 0x3d4   :  { %v2270_v61 = vpop.eup %1700  ;;  %v600_v10 = vmul.f32 1.442695, %v569_v9 }
 0x3d5   :  { %v632_v62 = vsel %vm77_vm0, %v2270_v61, 0.0  ;;  %v2275_v63 = vpop.eup %1702 }
 0x3d6   :  { %633 = vadd.xlane.f32.xlu1 %v632_v62  ;;  %v623_v41 = vsel %vm77_vm0, %v2275_v63, 0.0  ;;  %v2282_v38 = vpop.eup %1704  ;;  %1710 = vpow2.f32 %v600_v10 }
 0x3d7   :  { %v635_v43 = vsel %vm77_vm0, %v2282_v38, 0.0  ;;  %v2289_v31 = vpop.eup %1706 }
 0x3d8   :  { %v2293_v7 = vpop.eup %1708  ;;  %v611_v8 = vsel %vm77_vm0, %v2289_v31, 0.0 }
 0x3d9   :  { %v644_v36 = vsel %vm77_vm0, %v2293_v7, 0.0 }
 0x3dc   :  { %v2301_v11 = vpop.eup %1710 }
 0x3dd   :  { %v647_v54 = vsel %vm77_vm0, %v2301_v11, 0.0 }
 0x3de   :  { %624 = vadd.xlane.f32.xlu1 %v623_v41 }
 0x3e0   :  { %v1652_v37 = vpop.permute.xlu1 %1651 }
 0x3e1   :  { %v1653_v40 = vunpack.i.l.bf16 %v1652_v37  ;;  %v1654_v59 = vunpack.i.h.bf16 %v1652_v37 }
 0x3e3   :  { %926 = vmatpush.msra.mxu1 %v1653_v40 }
 0x3e5   :  { %927 = vmatpush.msra.mxu1 %v1654_v59 }
 0x3e6   :  { %1656 = vrot.lane.b32.xlu2 %v1655_v19, %s1869_s13  ;;  %636 = vadd.xlane.f32.xlu1 %v635_v43  ;;  %v661_v19 = vand.u32 2147483648, %v2238_v13 }
 0x3ee   :  { %1666 = vrot.lane.b32.xlu2 %v1665_v60, %s1869_s13  ;;  %612 = vadd.xlane.f32.xlu1 %v611_v8  ;;  %v659_v60 = vand.u32 2147483647, %v2238_v13 }
 0x3f1   :  { %645 = vadd.xlane.f32.xlu0 %v644_v36  ;;  %v676_v36 = vand.u32 2147483648, %v2246_v28 }
 0x417   :  { %648 = vadd.xlane.f32.xlu2 %v647_v54  ;;  %v616_v56 = vpop.xlane.xlu2 %615  ;;  %v674_v54 = vand.u32 2147483647, %v2246_v28 }
 0x418   :  { %1712 = vrcp.f32 %v616_v56  ;;  %v721_v3 = vand.u32 2147483648, %v616_v56  ;;  %v719_v55 = vand.u32 2147483647, %v616_v56  ;;  %vm715_vm1 = vweird.f32 %v616_v56 }
 0x41a   :  { %v722_v27 = vor.u32 1.1754944e-38, %v721_v3  ;;  %vm720_vm3 = vcmp.eq.f32.partialorder %v719_v55, 8.507059e+37 }
 0x41e   :  { %v1713_v17 = vpop.eup %1712  ;;  %v619_v18 = vpop.xlane.xlu0 %618 }
 0x41f   :  { %v711_v20 = vmul.f32 %v1713_v17, %v616_v56  ;;  %1714 = vrcp.f32 %v619_v18  ;;  %vm716_vm15 = vweird.f32 %v1713_v17  ;;  %v736_v23 = vand.u32 2147483648, %v619_v18 }
 0x420   :  { %1716 = vrcp.f32 %v2238_v13  ;;  %vm717_vm2 = vmor %vm715_vm1, %vm716_vm15  ;;  %v734_v39 = vand.u32 2147483647, %v619_v18  ;;  %vm730_vm5 = vweird.f32 %v619_v18  ;;  %v662_v56 = vor.u32 1.1754944e-38, %v661_v19 }
 0x421   :  { %v712_v22 = vsub.f32 1.0, %v711_v20  ;;  %1718 = vrcp.f32 %v2246_v28  ;;  %v737_v57 = vor.u32 1.1754944e-38, %v736_v23  ;;  %vm660_vm15 = vcmp.eq.f32.partialorder %v659_v60, 8.507059e+37 }
 0x422   :  { %vm735_vm7 = vcmp.eq.f32.partialorder %v734_v39, 8.507059e+37  ;;  %vm675_vm1 = vcmp.eq.f32.partialorder %v674_v54, 8.507059e+37 }
 0x423   :  { %v713_v24 = vmul.f32 %v1713_v17, %v712_v22 }
 0x425   :  { %v1715_v53 = vpop.eup %1714  ;;  %v714_v25 = vadd.f32 %v1713_v17, %v713_v24 }
 0x426   :  { %v726_v30 = vmul.f32 %v1715_v53, %v619_v18  ;;  %v1717_v29 = vpop.eup %1716  ;;  %vm731_vm4 = vweird.f32 %v1715_v53  ;;  %v2311_v62 = vpop.xlane.xlu0 %609  ;;  %v677_v18 = vor.u32 1.1754944e-38, %v676_v36 }
 0x427   :  { %v718_v16 = vsel %vm717_vm2, %v1713_v17, %v714_v25  ;;  %v1719_v52 = vpop.eup %1718  ;;  %v651_v50 = vmul.f32 %v1717_v29, %v2238_v13  ;;  %vm732_vm6 = vmor %vm730_vm5, %vm731_vm4  ;;  %1720 = vrcp.f32 %v2311_v62  ;;  %vm656_vm8 = vweird.f32 %v1717_v29 }
 0x428   :  { %v727_v12 = vsub.f32 1.0, %v726_v30  ;;  %v723_v35 = vsel %vm720_vm3, %v722_v27, %v718_v16  ;;  %v666_v58 = vmul.f32 %v1719_v52, %v2246_v28  ;;  %vm671_vm10 = vweird.f32 %v1719_v52  ;;  %vm657_vm11 = vmor %vm655_vm9, %vm656_vm8 }
 0x429   :  { %v724_v45 = vmul.f32 %v2224_v4, %v723_v35  ;;  %v652_v4 = vsub.f32 1.0, %v651_v50  ;;  %vm672_vm13 = vmor %vm670_vm12, %vm671_vm10  ;;  %vm685_vm2 = vweird.f32 %v2311_v62  ;;  %v689_v39 = vand.u32 2147483647, %v2311_v62 }
 0x42a   :  { %v728_v47 = vmul.f32 %v1715_v53, %v727_v12  ;;  %v667_v1 = vsub.f32 1.0, %v666_v58 }
 0x42b   :  { %1574 = vmatmul.msk.f32.vlgmr.msrb.gmra.mxu2 %vm77_vm0, %v724_v45  ;;  %v653_v2 = vmul.f32 %v1717_v29, %v652_v4 }
 0x42c   :  { %v729_v34 = vadd.f32 %v1715_v53, %v728_v47  ;;  %v668_v37 = vmul.f32 %v1719_v52, %v667_v1 }
 0x42d   :  { %v2319_v40 = vpop.eup %1720  ;;  %v654_v48 = vadd.f32 %v1717_v29, %v653_v2 }
 0x42e   :  { %v733_v44 = vsel %vm732_vm6, %v1715_v53, %v729_v34  ;;  %v669_v8 = vadd.f32 %v1719_v52, %v668_v37  ;;  %v681_v51 = vmul.f32 %v2319_v40, %v2311_v62  ;;  %vm686_vm5 = vweird.f32 %v2319_v40 }
 0x42f   :  { %v738_v42 = vsel %vm735_vm7, %v737_v57, %v733_v44  ;;  %v658_v9 = vsel %vm657_vm11, %v1717_v29, %v654_v48 }
 0x430   :  { %v739_v41 = vmul.f32 %v2228_v5, %v738_v42  ;;  %v673_v13 = vsel %vm672_vm13, %v1719_v52, %v669_v8  ;;  %v663_v17 = vsel %vm660_vm15, %v662_v56, %v658_v9  ;;  %v682_v20 = vsub.f32 1.0, %v681_v51  ;;  %vm2401_vm13 = vmor %vm685_vm2, %vm686_vm5 }
 0x431   :  { %v2313_v0 = vpop.xlane.xlu1 %639  ;;  %v678_v53 = vsel %vm675_vm1, %v677_v18, %v673_v13  ;;  %v2342_v28 = vmul.f32 %v2172_v15, %v663_v17  ;;  %v691_v15 = vand.u32 2147483648, %v2311_v62 }
 0x432   :  { %1722 = vrcp.f32 %v2313_v0  ;;  %v683_v27 = vmul.f32 %v2319_v40, %v682_v20  ;;  %v839_v30 = vand.u32 2147483647, %v2313_v0  ;;  %v841_v16 = vand.u32 2147483648, %v2313_v0 }
 0x433   :  { %1575 = vmatmul.msk.f32.gmra.mxu2 %vm77_vm0, %v739_v41  ;;  %v2353_v23 = vmul.f32 %v2185_v26, %v678_v53  ;;  %vm835_vm3 = vweird.f32 %v2313_v0 }
 0x434   :  { %vm2359_vm6 = vcmp.eq.f32.partialorder %v839_v30, 8.507059e+37  ;;  %v842_v57 = vor.u32 1.1754944e-38, %v841_v16  ;;  %v2366_v58 = vadd.f32 %v2319_v40, %v683_v27 }
 0x436   :  { %v688_v53 = vsel %vm2401_vm13, %v2319_v40, %v2366_v58 }
 0x438   :  { %v2321_v59 = vpop.eup %1722 }
 0x439   :  { %v2324_v43 = vpop.xlane.xlu2 %642  ;;  %v628_v5 = vpop.xlane.xlu1 %627  ;;  %v831_v10 = vmul.f32 %v2321_v59, %v2313_v0  ;;  %vm836_vm7 = vweird.f32 %v2321_v59 }
 0x43a   :  { %1724 = vrcp.f32 %v628_v5  ;;  %v779_v45 = vand.u32 2147483647, %v628_v5  ;;  %v781_v47 = vand.u32 2147483648, %v628_v5  ;;  %v1662_v50 = vpop.permute.xlu0 %1661  ;;  %vm775_vm8 = vweird.f32 %v628_v5  ;;  %vm2384_vm11 = vmor %vm835_vm3, %vm836_vm7 }
 0x43b   :  { %1726 = vrcp.f32 %v2324_v43  ;;  %v832_v22 = vsub.f32 1.0, %v831_v10  ;;  %v1664_v2 = vunpack.i.h.bf16 %v1662_v50  ;;  %v1663_v13 = vunpack.i.l.bf16 %v1662_v50 }
 0x43c   :  { %vm780_vm10 = vcmp.eq.f32.partialorder %v779_v45, 8.507059e+37  ;;  %v782_v1 = vor.u32 1.1754944e-38, %v781_v47  ;;  %vm850_vm2 = vweird.f32 %v2324_v43 }
 0x43d   :  { %v833_v35 = vmul.f32 %v2321_v59, %v832_v22 }
 0x43f   :  { %v834_v42 = vadd.f32 %v2321_v59, %v833_v35 }
 0x440   :  { %v1725_v3 = vpop.eup %1724 }
 0x441   :  { %v2336_v24 = vpop.xlane.xlu2 %630  ;;  %v2338_v55 = vpop.xlane.xlu1 %621  ;;  %v771_v25 = vmul.f32 %v1725_v3, %v628_v5  ;;  %vm776_vm4 = vweird.f32 %v1725_v3  ;;  %v838_v56 = vsel %vm2384_vm11, %v2321_v59, %v834_v42 }
 0x442   :  { %1728 = vrcp.f32 %v2336_v24  ;;  %v2348_v12 = vpop.eup %1726  ;;  %vm777_vm9 = vmor %vm775_vm8, %vm776_vm4  ;;  %v796_v20 = vand.u32 2147483648, %v2336_v24  ;;  %v751_v22 = vand.u32 2147483648, %v2338_v55  ;;  %vm790_vm15 = vweird.f32 %v2336_v24 }
 0x443   :  { %1730 = vrcp.f32 %v2338_v55  ;;  %v772_v29 = vsub.f32 1.0, %v771_v25  ;;  %v846_v26 = vmul.f32 %v2348_v12, %v2324_v43  ;;  %v749_v30 = vand.u32 2147483647, %v2338_v55 }
 0x444   :  { %vm851_vm4 = vweird.f32 %v2348_v12  ;;  %v797_v35 = vor.u32 1.1754944e-38, %v796_v20  ;;  %vm745_vm5 = vweird.f32 %v2338_v55 }
 0x445   :  { %v773_v52 = vmul.f32 %v1725_v3, %v772_v29  ;;  %v847_v9 = vsub.f32 1.0, %v846_v26  ;;  %v752_v29 = vor.u32 1.1754944e-38, %v751_v22  ;;  %vm750_vm8 = vcmp.eq.f32.partialorder %v749_v30, 8.507059e+37 }
 0x447   :  { %v774_v4 = vadd.f32 %v1725_v3, %v773_v52  ;;  %v848_v25 = vmul.f32 %v2348_v12, %v847_v9 }
 0x448   :  { %v2368_v44 = vpop.eup %1728 }
 0x449   :  { %v2372_v41 = vpop.eup %1730  ;;  %v786_v37 = vmul.f32 %v2368_v44, %v2336_v24  ;;  %v1657_v48 = vpop.permute.xlu2 %1656  ;;  %v778_v60 = vsel %vm777_vm9, %v1725_v3, %v774_v4  ;;  %vm791_vm12 = vweird.f32 %v2368_v44  ;;  %v794_v3 = vand.u32 2147483647, %v2336_v24 }
 0x44a   :  { %v2376_v19 = vpop.xlane.xlu1 %633  ;;  %v741_v8 = vmul.f32 %v2372_v41, %v2338_v55  ;;  %v1659_v36 = vunpack.i.h.bf16 %v1657_v48  ;;  %v1658_v51 = vunpack.i.l.bf16 %v1657_v48  ;;  %v783_v10 = vsel %vm780_vm10, %v782_v1, %v778_v60  ;;  %vm2424_vm3 = vmor %vm790_vm15, %vm791_vm12 }
 0x44b   :  { %v787_v54 = vsub.f32 1.0, %v786_v37  ;;  %1732 = vrcp.f32 %v2376_v19  ;;  %v784_v18 = vmul.f32 %v2249_v32, %v783_v10  ;;  %vm746_vm1 = vweird.f32 %v2372_v41  ;;  %vm2459_vm10 = vmor %vm850_vm2, %vm851_vm4 }
 0x44c   :  { %v742_v17 = vsub.f32 1.0, %v741_v8  ;;  %928 = vmatpush.msra.mxu1 %v1658_v51  ;;  %1085 = vmatpush.msra.mxu0 %v1659_v36  ;;  %v843_v24 = vsel %vm2359_vm6, %v842_v57, %v838_v56  ;;  %vm795_vm6 = vcmp.eq.f32.partialorder %v794_v3, 8.507059e+37  ;;  %vm747_vm7 = vmor %vm745_vm5, %vm746_vm1  ;;  %v849_v26 = vadd.f32 %v2348_v12, %v848_v25 }
 0x44d   :  { %v788_v0 = vmul.f32 %v2368_v44, %v787_v54  ;;  %1578 = vmatmul.msk.f32.vlgmr.msra.gmra.mxu3 %vm77_vm0, %v784_v18  ;;  %v856_v1 = vand.u32 2147483648, %v2324_v43  ;;  %v854_v48 = vand.u32 2147483647, %v2324_v43  ;;  %v809_v8 = vand.u32 2147483647, %v2376_v19 }
 0x44e   :  { %v743_v32 = vmul.f32 %v2372_v41, %v742_v17  ;;  %929 = vmatpush.msra.mxu1 %v1663_v13  ;;  %1086 = vmatpush.msra.mxu0 %v1664_v2  ;;  %v811_v2 = vand.u32 2147483648, %v2376_v19  ;;  %vm805_vm11 = vweird.f32 %v2376_v19  ;;  %vm690_vm12 = vcmp.eq.f32.partialorder %v689_v39, 8.507059e+37 }
 0x44f   :  { %1570 = vmatmul.msk.f32.vlgmr.msra.gmra.mxu1 %vm77_vm0, %v2342_v28  ;;  %v789_v27 = vadd.f32 %v2368_v44, %v788_v0  ;;  %vm810_vm15 = vcmp.eq.f32.partialorder %v809_v8, 8.507059e+37  ;;  %vm855_vm1 = vcmp.eq.f32.partialorder %v854_v48, 8.507059e+37 }
 0x450   :  { %v744_v16 = vadd.f32 %v2372_v41, %v743_v32  ;;  %v812_v51 = vor.u32 1.1754944e-38, %v811_v2 }
 0x451   :  { %v1733_v28 = vpop.eup %1732  ;;  %v1667_v45 = vpop.permute.xlu2 %1666  ;;  %v793_v52 = vsel %vm2424_vm3, %v2368_v44, %v789_v27 }
 0x452   :  { %v2431_v47 = vpop.xlane.xlu1 %624  ;;  %v801_v50 = vmul.f32 %v1733_v28, %v2376_v19  ;;  %v1668_v34 = vunpack.i.l.bf16 %v1667_v45  ;;  %v798_v57 = vsel %vm795_vm6, %v797_v35, %v793_v52  ;;  %v748_v55 = vsel %vm747_vm7, %v2372_v41, %v744_v16 }
 0x453   :  { %1734 = vrcp.f32 %v2431_v47  ;;  %v1669_v42 = vunpack.i.h.bf16 %v1667_v45  ;;  %v799_v44 = vmul.f32 %v2260_v46, %v798_v57  ;;  %v753_v4 = vsel %vm750_vm8, %v752_v29, %v748_v55 }
 0x454   :  { %v802_v58 = vsub.f32 1.0, %v801_v50  ;;  %1087 = vmatpush.msra.mxu0 %v1668_v34  ;;  %v754_v37 = vmul.f32 %v2263_v49, %v753_v4  ;;  %v844_v41 = vmul.f32 %v2241_v21, %v843_v24  ;;  %vm806_vm9 = vweird.f32 %v1733_v28  ;;  %v1103_v49 = vld [vmem:[#allocation5 + $0x8] sm:$0xff] }
 0x455   :  { %1579 = vmatmul.msk.f32.gmra.mxu3 %vm77_vm0, %v799_v44  ;;  %v692_v46 = vor.u32 1.1754944e-38, %v691_v15  ;;  %v857_v15 = vor.u32 1.1754944e-38, %v856_v1  ;;  %vm807_vm13 = vmor %vm805_vm11, %vm806_vm9  ;;  %v766_v39 = vand.u32 2147483648, %v2431_v47  ;;  %v764_v17 = vand.u32 2147483647, %v2431_v47  ;;  %1174 = vmatpush.msra.mxu2 %v1103_v49 }
 0x456   :  { %v803_v60 = vmul.f32 %v1733_v28, %v802_v58  ;;  %1088 = vmatpush.msra.mxu0 %v1669_v42  ;;  %1576 = vmatmul.msk.f32.gmra.mxu2 %vm77_vm0, %v754_v37  ;;  %vm760_vm3 = vweird.f32 %v2431_v47 }
 0x457   :  { %1571 = vmatmul.msk.f32.gmra.mxu1 %vm77_vm0, %v2353_v23  ;;  %1582 = vmatmul.msk.f32.vlgmr.msra.gmra.mxu0 %vm77_vm0, %v844_v41  ;;  %v853_v23 = vsel %vm2459_vm10, %v2348_v12, %v849_v26  ;;  %v693_v9 = vsel %vm690_vm12, %v692_v46, %v688_v53  ;;  %v767_v22 = vor.u32 1.1754944e-38, %v766_v39  ;;  %vm765_vm5 = vcmp.eq.f32.partialorder %v764_v17, 8.507059e+37  ;;  %v1105_v39 = vld [vmem:[#allocation5 + $0x18] sm:$0xff] }
 0x458   :  { %v804_v36 = vadd.f32 %v1733_v28, %v803_v60  ;;  %v858_v62 = vsel %vm855_vm1, %v857_v15, %v853_v23  ;;  %v694_v13 = vmul.f32 %v2232_v6, %v693_v9  ;;  %1256 = vmatpush.msrb.mxu0 %v1105_v39 }
 0x459   :  { %v1735_v21 = vpop.eup %1734  ;;  %v859_v18 = vmul.f32 %v2251_v33, %v858_v62  ;;  %v1104_v62 = vld [vmem:[#allocation5 + $0x10] sm:$0xff] }
 0x45a   :  { %v756_v43 = vmul.f32 %v1735_v21, %v2431_v47  ;;  %v637_v5 = vpop.xlane.xlu1 %636  ;;  %v808_v19 = vsel %vm807_vm13, %v1733_v28, %v804_v36  ;;  %vm761_vm2 = vweird.f32 %v1735_v21  ;;  %1215 = vmatpush.msrb.mxu3 %v1104_v62 }
 0x45b   :  { %1736 = vrcp.f32 %v637_v5  ;;  %v813_v54 = vsel %vm810_vm15, %v812_v51, %v808_v19  ;;  %vm762_vm4 = vmor %vm760_vm3, %vm761_vm2  ;;  %v826_v33 = vand.u32 2147483648, %v637_v5  ;;  %v824_v30 = vand.u32 2147483647, %v637_v5 }
 0x45c   :  { %v757_v10 = vsub.f32 1.0, %v756_v43  ;;  %v814_v56 = vmul.f32 %v2270_v61, %v813_v54  ;;  %vm820_vm7 = vweird.f32 %v637_v5 }
 0x45d   :  { %v827_v16 = vor.u32 1.1754944e-38, %v826_v33  ;;  %vm825_vm9 = vcmp.eq.f32.partialorder %v824_v30, 8.507059e+37 }
 0x45e   :  { %v758_v12 = vmul.f32 %v1735_v21, %v757_v10  ;;  %1580 = vmatmul.msk.f32.gmra.mxu3 %vm77_vm0, %v814_v56  ;;  %v1102_v10 = vld [vmem:[#allocation5] sm:$0xff] }
 0x45f   :  { %1572 = vmatmul.msk.f32.gmra.mxu1 %vm77_vm0, %v694_v13  ;;  %1583 = vmatmul.msk.f32.gmra.mxu0 %vm77_vm0, %v859_v18 }
 0x460   :  { %v759_v0 = vadd.f32 %v1735_v21, %v758_v12  ;;  %1133 = vmatpush.msrb.mxu1 %v1102_v10  ;;  %v1755_v10 = vld [vmem:[%s2632_s0 + $0x10] sm:$0xff] }
 0x461   :  { %v1737_v20 = vpop.eup %1736 }
 0x462   :  { %v816_v61 = vmul.f32 %v1737_v20, %v637_v5  ;;  %v613_v59 = vpop.xlane.xlu1 %612  ;;  %v763_v6 = vsel %vm762_vm4, %v1735_v21, %v759_v0  ;;  %vm821_vm6 = vweird.f32 %v1737_v20 }
 0x463   :  { %1738 = vrcp.f32 %v613_v59  ;;  %v768_v32 = vsel %vm765_vm5, %v767_v22, %v763_v6  ;;  %vm822_vm8 = vmor %vm820_vm7, %vm821_vm6  ;;  %v706_v52 = vand.u32 2147483648, %v613_v59  ;;  %v704_v57 = vand.u32 2147483647, %v613_v59 }
 0x464   :  { %v817_v3 = vsub.f32 1.0, %v816_v61  ;;  %v769_v53 = vmul.f32 %v2275_v63, %v768_v32  ;;  %v646_v25 = vpop.xlane.xlu0 %645  ;;  %vm700_vm11 = vweird.f32 %v613_v59 }
 0x465   :  { %1740 = vrcp.f32 %v646_v25  ;;  %v871_v26 = vand.u32 2147483648, %v646_v25  ;;  %v707_v42 = vor.u32 1.1754944e-38, %v706_v52  ;;  %v869_v4 = vand.u32 2147483647, %v646_v25 }
 0x466   :  { %v818_v27 = vmul.f32 %v1737_v20, %v817_v3  ;;  %1577 = vmatmul.msk.f32.gmra.mxu2 %vm77_vm0, %v769_v53  ;;  %vm705_vm15 = vcmp.eq.f32.partialorder %v704_v57, 8.507059e+37  ;;  %vm865_vm1 = vweird.f32 %v646_v25 }
 0x467   :  { %v872_v37 = vor.u32 1.1754944e-38, %v871_v26  ;;  %vm870_vm3 = vcmp.eq.f32.partialorder %v869_v4, 8.507059e+37 }
 0x468   :  { %v819_v24 = vadd.f32 %v1737_v20, %v818_v27 }
 0x469   :  { %v1739_v40 = vpop.eup %1738 }
 0x46a   :  { %v696_v28 = vmul.f32 %v1739_v40, %v613_v59  ;;  %v823_v35 = vsel %vm822_vm8, %v1737_v20, %v819_v24  ;;  %vm701_vm10 = vweird.f32 %v1739_v40 }
 0x46b   :  { %v828_v29 = vsel %vm825_vm9, %v827_v16, %v823_v35  ;;  %v1741_v45 = vpop.eup %1740  ;;  %vm702_vm12 = vmor %vm700_vm11, %vm701_vm10 }
 0x46c   :  { %v697_v47 = vsub.f32 1.0, %v696_v28  ;;  %v829_v63 = vmul.f32 %v2282_v38, %v828_v29  ;;  %v861_v50 = vmul.f32 %v1741_v45, %v646_v25  ;;  %vm866_vm13 = vweird.f32 %v1741_v45 }
 0x46d   :  { %vm867_vm2 = vmor %vm865_vm1, %vm866_vm13 }
 0x46e   :  { %v698_v34 = vmul.f32 %v1739_v40, %v697_v47  ;;  %1581 = vmatmul.msk.f32.gmra.mxu3 %vm77_vm0, %v829_v63  ;;  %v862_v55 = vsub.f32 1.0, %v861_v50 }
 0x470   :  { %v699_v58 = vadd.f32 %v1739_v40, %v698_v34  ;;  %v863_v44 = vmul.f32 %v1741_v45, %v862_v55 }
 0x472   :  { %v703_v1 = vsel %vm702_vm12, %v1739_v40, %v699_v58  ;;  %v864_v2 = vadd.f32 %v1741_v45, %v863_v44  ;;  %v1753_v44 = vld [vmem:[%s2632_s0] sm:$0xff] }
 0x473   :  { %v708_v38 = vsel %vm705_vm15, %v707_v42, %v703_v1 }
 0x474   :  { %v709_v48 = vmul.f32 %v2289_v31, %v708_v38  ;;  %v868_v60 = vsel %vm867_vm2, %v1741_v45, %v864_v2  ;;  %v2510_v45 = vld [vmem:[#allocation2] sm:$0xff] }
 0x475   :  { %v873_v41 = vsel %vm870_vm3, %v872_v37, %v868_v60  ;;  %v1298_v47 = vperm.slane %v2510_v45, 3 }
 0x476   :  { %1573 = vmatmul.msk.f32.gmra.mxu1 %vm77_vm0, %v709_v48  ;;  %v874_v8 = vmul.f32 %v2293_v7, %v873_v41  ;;  %v1754_v41 = vld [vmem:[%s2632_s0 + $0x8] sm:$0xff] }
 0x478   :  { %1584 = vmatmul.msk.f32.gmra.mxu0 %vm77_vm0, %v874_v8 }
 0x48a   :  { %v649_v46 = vpop.xlane.xlu2 %648 }
 0x48b   :  { %1742 = vrcp.f32 %v649_v46  ;;  %v886_v15 = vand.u32 2147483648, %v649_v46  ;;  %v884_v31 = vand.u32 2147483647, %v649_v46  ;;  %vm880_vm5 = vweird.f32 %v649_v46 }
 0x48d   :  { %v887_v5 = vor.u32 1.1754944e-38, %v886_v15  ;;  %vm885_vm7 = vcmp.eq.f32.partialorder %v884_v31, 8.507059e+37 }
 0x491   :  { %v1743_v21 = vpop.eup %1742 }
 0x492   :  { %v876_v36 = vmul.f32 %v1743_v21, %v649_v46  ;;  %vm881_vm4 = vweird.f32 %v1743_v21 }
 0x493   :  { %vm882_vm6 = vmor %vm880_vm5, %vm881_vm4  ;;  %vm1464_vm5 = vcmask 523264  }
 0x494   :  { %v877_v23 = vsub.f32 1.0, %v876_v36 }
 0x496   :  { %v878_v51 = vmul.f32 %v1743_v21, %v877_v23 }
 0x498   :  { %v879_v43 = vadd.f32 %v1743_v21, %v878_v51 }
 0x49a   :  { %v883_v9 = vsel %vm882_vm6, %v1743_v21, %v879_v43 }
 0x49b   :  { %v888_v7 = vsel %vm885_vm7, %v887_v5, %v883_v9 }
 0x49c   :  { %v889_v19 = vmul.f32 %v2301_v11, %v888_v7 }
 0x49e   :  { %1585 = vmatmul.msk.f32.gmra.mxu0 %vm77_vm0, %v889_v19 }
 0x4ae   :  { %v984_v54 = vpop.f32.mrf.mxu2 }
 0x4af   :  { %1590 = vmatmul.msk.f32.vlgmr.msra.gmra.mxu2 %vm265_vm14, %v984_v54 }
 0x4b6   :  { %v987_v56 = vpop.f32.mrf.mxu2 }
 0x4b7   :  { %1591 = vmatmul.msk.f32.gmra.mxu2 %vm265_vm14, %v987_v56 }
 0x4cc   :  { %v931_v12 = vpop.f32.mrf.mxu1 }
 0x4cd   :  { %1586 = vmatmul.msk.f32.vlgmr.msrb.gmra.mxu1 %vm265_vm14, %v931_v12 }
 0x4d0   :  { %v1037_v13 = vpop.f32.mrf.mxu3 }
 0x4d1   :  { %1594 = vmatmul.msk.f32.vlgmr.msrb.gmra.mxu3 %vm265_vm14, %v1037_v13 }
 0x4d4   :  { %v934_v11 = vpop.f32.mrf.mxu1  ;;  %v1090_v17 = vpop.f32.mrf.mxu0 }
 0x4d5   :  { %1587 = vmatmul.msk.f32.gmra.mxu1 %vm265_vm14, %v934_v11  ;;  %1598 = vmatmul.msk.f32.vlgmr.msrb.gmra.mxu0 %vm265_vm14, %v1090_v17 }
 0x4d8   :  { %v1040_v18 = vpop.f32.mrf.mxu3 }
 0x4d9   :  { %v990_v0 = vpop.f32.mrf.mxu2  ;;  %1595 = vmatmul.msk.f32.gmra.mxu3 %vm265_vm14, %v1040_v18 }
 0x4da   :  { %1592 = vmatmul.msk.f32.gmra.mxu2 %vm265_vm14, %v990_v0 }
 0x4dc   :  { %v937_v20 = vpop.f32.mrf.mxu1  ;;  %v1093_v22 = vpop.f32.mrf.mxu0 }
 0x4dd   :  { %1588 = vmatmul.msk.f32.gmra.mxu1 %vm265_vm14, %v937_v20  ;;  %1599 = vmatmul.msk.f32.gmra.mxu0 %vm265_vm14, %v1093_v22 }
 0x4e1   :  { %v1043_v61 = vpop.f32.mrf.mxu3 }
 0x4e2   :  { %1596 = vmatmul.msk.f32.gmra.mxu3 %vm265_vm14, %v1043_v61 }
 0x4e9   :  { %v993_v59 = vpop.f32.mrf.mxu2 }
 0x4ea   :  { %1593 = vmatmul.msk.f32.gmra.mxu2 %vm265_vm14, %v993_v59 }
 0x4f1   :  { %v1046_v6 = vpop.f32.mrf.mxu3 }
 0x4f2   :  { %1597 = vmatmul.msk.f32.gmra.mxu3 %vm265_vm14, %v1046_v6  ;;  %v1756_v6 = vld [vmem:[%s2632_s0 + $0x18] sm:$0xff] }
 0x4f3   :  { %v940_v32 = vpop.f32.mrf.mxu1 }
 0x4f4   :  { %1589 = vmatmul.msk.f32.gmra.mxu1 %vm265_vm14, %v940_v32 }
 0x4f5   :  { %v1096_v3 = vpop.f32.mrf.mxu0 }
 0x4f6   :  { %1600 = vmatmul.msk.f32.gmra.mxu0 %vm265_vm14, %v1096_v3 }
 0x51b   :  { %v1099_v53 = vpop.f32.mrf.mxu0 }
 0x51c   :  { %1601 = vmatmul.msk.f32.gmra.mxu0 %vm265_vm14, %v1099_v53 }
 0x532   :  { %v1176_v25 = vpop.f32.mrf.mxu2 }
 0x533   :  { %v1271_v24 = vsel %vm77_vm0, %v1176_v25, 0.0 }
 0x53a   :  { %v1179_v52 = vpop.f32.mrf.mxu2 }
 0x53b   :  { %v1278_v55 = vsel %vm77_vm0, %v1179_v52, 0.0 }
 0x54a   :  { %v1135_v33 = vpop.f32.mrf.mxu1 }
 0x54b   :  { %v1270_v27 = vsel %vm77_vm0, %v1135_v33, 0.0 }
 0x54c   :  { %v1272_v40 = vadd.f32 %v1271_v24, %v1270_v27 }
 0x552   :  { %v1258_v30 = vpop.f32.mrf.mxu0  ;;  %v1138_v35 = vpop.f32.mrf.mxu1 }
 0x553   :  { %v1275_v63 = vsel %vm77_vm0, %v1258_v30, 0.0  ;;  %v1277_v34 = vsel %vm77_vm0, %v1138_v35, 0.0 }
 0x554   :  { %v1217_v16 = vpop.f32.mrf.mxu3  ;;  %v1279_v26 = vadd.f32 %v1278_v55, %v1277_v34 }
 0x555   :  { %v1273_v28 = vsel %vm77_vm0, %v1217_v16, 0.0 }
 0x556   :  { %v1274_v29 = vadd.f32 %v1273_v28, %v1272_v40 }
 0x558   :  { %v1276_v50 = vadd.f32 %v1275_v63, %v1274_v29 }
 0x55a   :  { %v1299_v57 = vadd.f32 %v1298_v47, %v1276_v50  ;;  %v1261_v58 = vpop.f32.mrf.mxu0  ;;  %v1141_v21 = vpop.f32.mrf.mxu1 }
 0x55b   :  { %v1282_v37 = vsel %vm77_vm0, %v1261_v58, 0.0  ;;  %v1284_v15 = vsel %vm77_vm0, %v1141_v21, 0.0 }
 0x55c   :  { %v1220_v42 = vpop.f32.mrf.mxu3  ;;  %v2519_v4 = vadd.f32 %v1753_v44, %v1299_v57  ;;  %v1407_v44 = vld [vmem:[#allocation7 + $0x10] sm:$0xff] }
 0x55d   :  { %v1280_v1 = vsel %vm77_vm0, %v1220_v42, 0.0  ;;  %v1182_v49 = vpop.f32.mrf.mxu2  ;;  %v1408_v42 = vld [vmem:[#allocation7 + $0x18] sm:$0xff] }
 0x55e   :  { %v1281_v38 = vadd.f32 %v1280_v1, %v1279_v26  ;;  %v1307_v2 = vsel %vm77_vm0, %v2519_v4, 0.0  ;;  %v1285_v23 = vsel %vm77_vm0, %v1182_v49, 0.0  ;;  %1434 = vmatpush.msra.mxu1 %v1408_v42  ;;  %v1406_v1 = vld [vmem:[#allocation7 + $0x8] sm:$0xff] }
 0x55f   :  { %1308 = vadd.xlane.f32.xlu1 %v1307_v2  ;;  %v1286_v31 = vadd.f32 %v1285_v23, %v1284_v15 }
 0x560   :  { %v1283_v48 = vadd.f32 %v1282_v37, %v1281_v38  ;;  %1435 = vmatpush.msra.mxu1 %v1407_v44  ;;  %v1405_v38 = vld [vmem:[#allocation7] sm:$0xff] }
 0x562   :  { %v1300_v60 = vadd.f32 %v1298_v47, %v1283_v48  ;;  %1436 = vmatpush.msra.mxu1 %v1406_v1 }
 0x564   :  { %v2528_v8 = vadd.f32 %v1754_v41, %v1300_v60  ;;  %1437 = vmatpush.msra.mxu1 %v1405_v38 }
 0x565   :  { %v1223_v36 = vpop.f32.mrf.mxu3 }
 0x566   :  { %v1310_v46 = vsel %vm77_vm0, %v2528_v8, 0.0  ;;  %v1287_v51 = vsel %vm77_vm0, %v1223_v36, 0.0 }
 0x567   :  { %1311 = vadd.xlane.f32.xlu1 %v1310_v46  ;;  %v1288_v43 = vadd.f32 %v1287_v51, %v1286_v31 }
 0x56d   :  { %v1185_v56 = vpop.f32.mrf.mxu2 }
 0x56e   :  { %v1292_v11 = vsel %vm77_vm0, %v1185_v56, 0.0 }
 0x571   :  { %v1144_v39 = vpop.f32.mrf.mxu1 }
 0x572   :  { %v1291_v13 = vsel %vm77_vm0, %v1144_v39, 0.0 }
 0x573   :  { %v1264_v5 = vpop.f32.mrf.mxu0  ;;  %v1293_v18 = vadd.f32 %v1292_v11, %v1291_v13 }
 0x574   :  { %v1289_v9 = vsel %vm77_vm0, %v1264_v5, 0.0  ;;  %v2577_v5 = vperm.slane %v2510_v45, 4 }
 0x575   :  { %v1290_v7 = vadd.f32 %v1289_v9, %v1288_v43  ;;  %v1226_v12 = vpop.f32.mrf.mxu3 }
 0x576   :  { %v1294_v17 = vsel %vm77_vm0, %v1226_v12, 0.0 }
 0x577   :  { %v1301_v19 = vadd.f32 %v1298_v47, %v1290_v7  ;;  %v1295_v0 = vadd.f32 %v1294_v17, %v1293_v18 }
 0x579   :  { %v2539_v54 = vadd.f32 %v1755_v10, %v1301_v19  ;;  %v1400_v10 = vperm.slane %v2510_v45, 5 }
 0x57b   :  { %v1313_v62 = vsel %vm77_vm0, %v2539_v54, 0.0 }
 0x57c   :  { %1314 = vadd.xlane.f32.xlu1 %v1313_v62 }
 0x599   :  { %v1267_v20 = vpop.f32.mrf.mxu0 }
 0x59a   :  { %v1296_v22 = vsel %vm77_vm0, %v1267_v20, 0.0 }
 0x59b   :  { %v1297_v61 = vadd.f32 %v1296_v22, %v1295_v0 }
 0x59d   :  { %v1302_v59 = vadd.f32 %v1298_v47, %v1297_v61 }
 0x59f   :  { %v2550_v32 = vadd.f32 %v1756_v6, %v1302_v59 }
 0x5a1   :  { %v1316_v3 = vsel %vm77_vm0, %v2550_v32, 0.0 }
 0x5a2   :  { %1317 = vadd.xlane.f32.xlu1 %v1316_v3 }
 0x5d2   :  { %v1309_v53 = vpop.xlane.xlu1 %1308 }
 0x5d3   :  { %v1319_v33 = vmul.f32 %v1309_v53, %v1942_v14 }
 0x5d5   :  { %v1323_v25 = vsub.f32 %v2519_v4, %v1319_v33 }
 0x5d7   :  { %v1327_v27 = vmul.f32 %v1323_v25, %v1323_v25 }
 0x5d9   :  { %v1331_v30 = vsel %vm77_vm0, %v1327_v27, 0.0 }
 0x5da   :  { %1332 = vadd.xlane.f32.xlu0 %v1331_v30  ;;  %v1312_v24 = vpop.xlane.xlu1 %1311 }
 0x5db   :  { %v1320_v40 = vmul.f32 %v1312_v24, %v1942_v14 }
 0x5dd   :  { %v1324_v16 = vsub.f32 %v2528_v8, %v1320_v40 }
 0x5df   :  { %v1328_v28 = vmul.f32 %v1324_v16, %v1324_v16 }
 0x5e1   :  { %v1334_v35 = vsel %vm77_vm0, %v1328_v28, 0.0  ;;  %v1461_v28 = vld [vmem:[%s2638_s6 + $0x30] sm:$0xff] }
 0x5e2   :  { %1335 = vadd.xlane.f32.xlu1 %v1334_v35  ;;  %v1460_v35 = vld [vmem:[%s2638_s6 + $0x28] sm:$0xff] }
 0x5ef   :  { %v1315_v29 = vpop.xlane.xlu1 %1314 }
 0x5f0   :  { %v1321_v47 = vmul.f32 %v1315_v29, %v1942_v14 }
 0x5f2   :  { %v2562_v63 = vsub.f32 %v2539_v54, %v1321_v47 }
 0x5f4   :  { %v1329_v52 = vmul.f32 %v2562_v63, %v2562_v63 }
 0x5f6   :  { %v1337_v50 = vsel %vm77_vm0, %v1329_v52, 0.0 }
 0x5f7   :  { %1338 = vadd.xlane.f32.xlu0 %v1337_v50  ;;  %v1458_v50 = vld [vmem:[%s2638_s6 + $0x18] sm:$0xff] }
 0x615   :  { %v1318_v34 = vpop.xlane.xlu1 %1317 }
 0x616   :  { %v1322_v57 = vmul.f32 %v1318_v34, %v1942_v14 }
 0x618   :  { %v2569_v55 = vsub.f32 %v2550_v32, %v1322_v57 }
 0x61a   :  { %v1330_v26 = vmul.f32 %v2569_v55, %v2569_v55 }
 0x61c   :  { %v1340_v58 = vsel %vm77_vm0, %v1330_v26, 0.0 }
 0x61d   :  { %1341 = vadd.xlane.f32.xlu2 %v1340_v58 }
 0x64d   :  { %v1333_v2 = vpop.xlane.xlu0 %1332 }
 0x64e   :  { %v1343_v37 = vmul.f32 %v1333_v2, %v1942_v14 }
 0x650   :  { %v1347_v48 = vadd.f32 1e-05, %v1343_v37  ;;  %v1457_v37 = vld [vmem:[%s2638_s6 + $0x10] sm:$0xff] }
 0x652   :  { %1744 = vrsqrt.f32 %v1347_v48  ;;  %vm1357_vm8 = vweird.f32 %v1347_v48 }
 0x655   :  { %v1336_v60 = vpop.xlane.xlu1 %1335 }
 0x656   :  { %v1344_v41 = vmul.f32 %v1336_v60, %v1942_v14  ;;  %v1455_v60 = vld [vmem:[%s2638_s6] sm:$0xff] }
 0x658   :  { %v1745_v46 = vpop.eup %1744  ;;  %v1348_v49 = vadd.f32 1e-05, %v1344_v41 }
 0x659   :  { %v1352_v21 = vmul.f32 %v1745_v46, %v1347_v48  ;;  %vm1358_vm14 = vweird.f32 %v1745_v46  ;;  %v1456_v48 = vld [vmem:[%s2638_s6 + $0x8] sm:$0xff] }
 0x65a   :  { %1746 = vrsqrt.f32 %v1348_v49  ;;  %vm1359_vm9 = vmor %vm1357_vm8, %vm1358_vm14  ;;  %vm1367_vm11 = vweird.f32 %v1348_v49 }
 0x65b   :  { %v1353_v36 = vmul.f32 %v1745_v46, %v1352_v21 }
 0x65d   :  { %v1354_v23 = vmul.f32 0.5, %v1353_v36 }
 0x65f   :  { %v1355_v15 = vsub.f32 1.5, %v1354_v23 }
 0x660   :  { %v1747_v51 = vpop.eup %1746 }
 0x661   :  { %v1356_v31 = vmul.f32 %v1745_v46, %v1355_v15  ;;  %v1362_v43 = vmul.f32 %v1747_v51, %v1348_v49  ;;  %vm1368_vm10 = vweird.f32 %v1747_v51 }
 0x662   :  { %vm1369_vm12 = vmor %vm1367_vm11, %vm1368_vm10 }
 0x663   :  { %v1360_v9 = vsel %vm1359_vm9, %v1745_v46, %v1356_v31  ;;  %v1363_v7 = vmul.f32 %v1747_v51, %v1362_v43 }
 0x664   :  { %v1391_v19 = vmul.f32 %v1360_v9, %v1323_v25 }
 0x665   :  { %v1364_v62 = vmul.f32 0.5, %v1363_v7  ;;  %v1463_v7 = vperm.slane %v2510_v45, 7 }
 0x666   :  { %v1396_v39 = vmul.f32 %v2577_v5, %v1391_v19 }
 0x667   :  { %v1365_v56 = vsub.f32 1.5, %v1364_v62 }
 0x668   :  { %v1401_v12 = vadd.f32 %v1400_v10, %v1396_v39 }
 0x669   :  { %v1366_v13 = vmul.f32 %v1747_v51, %v1365_v56 }
 0x66a   :  { %v1339_v11 = vpop.xlane.xlu0 %1338  ;;  %1602 = vmatmul.msk.f32.vlgmr.msra.gmra.mxu1 %vm77_vm0, %v1401_v12 }
 0x66b   :  { %v1345_v17 = vmul.f32 %v1339_v11, %v1942_v14  ;;  %v1370_v18 = vsel %vm1369_vm12, %v1747_v51, %v1366_v13 }
 0x66c   :  { %v1392_v20 = vmul.f32 %v1370_v18, %v1324_v16  ;;  %v1462_v16 = vld [vmem:[%s2638_s6 + $0x38] sm:$0xff] }
 0x66d   :  { %v1349_v0 = vadd.f32 1e-05, %v1345_v17  ;;  %1485 = vmatpush.msrb.mxu2 %v1462_v16 }
 0x66e   :  { %v1397_v22 = vmul.f32 %v2577_v5, %v1392_v20 }
 0x66f   :  { %1748 = vrsqrt.f32 %v1349_v0  ;;  %vm1377_vm15 = vweird.f32 %v1349_v0  ;;  %1486 = vmatpush.msrb.mxu2 %v1461_v28 }
 0x670   :  { %v1402_v61 = vadd.f32 %v1400_v10, %v1397_v22 }
 0x671   :  { %1487 = vmatpush.msrb.mxu2 %v1460_v35 }
 0x672   :  { %1603 = vmatmul.msk.f32.gmra.mxu1 %vm77_vm0, %v1402_v61 }
 0x675   :  { %v1749_v59 = vpop.eup %1748 }
 0x676   :  { %v1372_v6 = vmul.f32 %v1749_v59, %v1349_v0  ;;  %vm1378_vm13 = vweird.f32 %v1749_v59 }
 0x677   :  { %vm1379_vm1 = vmor %vm1377_vm15, %vm1378_vm13 }
 0x678   :  { %v1373_v3 = vmul.f32 %v1749_v59, %v1372_v6 }
 0x67a   :  { %v1374_v53 = vmul.f32 0.5, %v1373_v3 }
 0x67c   :  { %v1375_v33 = vsub.f32 1.5, %v1374_v53 }
 0x67e   :  { %v1376_v25 = vmul.f32 %v1749_v59, %v1375_v33 }
 0x680   :  { %v1380_v27 = vsel %vm1379_vm1, %v1749_v59, %v1376_v25 }
 0x681   :  { %v1393_v30 = vmul.f32 %v1380_v27, %v2562_v63  ;;  %v1459_v63 = vld [vmem:[%s2638_s6 + $0x20] sm:$0xff]  ;;  %s1870_s6 = smov [#allocation8]  }
 0x682   :  { %1488 = vmatpush.msrb.mxu2 %v1459_v63  ;;  %s1518_s17 = sshll.u32 %s1870_s6, 4  ;;  %s1519_s17 = int_to_ptr.vmem [resolvable:$true] %s1518_s17 }
 0x683   :  { %v1398_v24 = vmul.f32 %v2577_v5, %v1393_v30 }
 0x684   :  { %1489 = vmatpush.msrb.mxu2 %v1458_v50 }
 0x685   :  { %v1403_v40 = vadd.f32 %v1400_v10, %v1398_v24 }
 0x686   :  { %1490 = vmatpush.msrb.mxu2 %v1457_v37 }
 0x687   :  { %1604 = vmatmul.msk.f32.gmra.mxu1 %vm77_vm0, %v1403_v40 }
 0x688   :  { %1491 = vmatpush.msrb.mxu2 %v1456_v48 }
 0x68a   :  { %1492 = vmatpush.msrb.mxu2 %v1455_v60 }
 0x690   :  { %v1342_v29 = vpop.xlane.xlu2 %1341 }
 0x691   :  { %v1346_v47 = vmul.f32 %v1342_v29, %v1942_v14 }
 0x693   :  { %v1350_v52 = vadd.f32 1e-05, %v1346_v47 }
 0x695   :  { %1750 = vrsqrt.f32 %v1350_v52  ;;  %vm1387_vm3 = vweird.f32 %v1350_v52 }
 0x69b   :  { %v1751_v34 = vpop.eup %1750 }
 0x69c   :  { %v1382_v57 = vmul.f32 %v1751_v34, %v1350_v52  ;;  %vm1388_vm2 = vweird.f32 %v1751_v34 }
 0x69d   :  { %vm1389_vm4 = vmor %vm1387_vm3, %vm1388_vm2 }
 0x69e   :  { %v1383_v26 = vmul.f32 %v1751_v34, %v1382_v57 }
 0x6a0   :  { %v1384_v58 = vmul.f32 0.5, %v1383_v26 }
 0x6a2   :  { %v1385_v42 = vsub.f32 1.5, %v1384_v58 }
 0x6a4   :  { %v1386_v14 = vmul.f32 %v1751_v34, %v1385_v42 }
 0x6a6   :  { %v1390_v44 = vsel %vm1389_vm4, %v1751_v34, %v1386_v14 }
 0x6a7   :  { %v1394_v1 = vmul.f32 %v1390_v44, %v2569_v55  ;;  %v1409_v55 = vperm.slane %v2510_v45, 6 }
 0x6a9   :  { %v1399_v38 = vmul.f32 %v2577_v5, %v1394_v1 }
 0x6ab   :  { %v1404_v2 = vadd.f32 %v1400_v10, %v1399_v38 }
 0x6ad   :  { %1605 = vmatmul.msk.f32.gmra.mxu1 %vm77_vm0, %v1404_v2 }
 0x6e7   :  { %v1439_v41 = vpop.f32.mrf.mxu1 }
 0x6e8   :  { %v1440_v46 = vadd.f32 %v1439_v41, %v1409_v55 }
 0x6ea   :  { %v1451_v49 = vmax.f32 %v1440_v46, 0.0 }
 0x6ec   :  { %1606 = vmatmul.msk.f32.vlgmr.msrb.gmra.mxu2 %vm1464_vm5, %v1451_v49 }
 0x6ef   :  { %v1442_v21 = vpop.f32.mrf.mxu1 }
 0x6f0   :  { %v1443_v36 = vadd.f32 %v1442_v21, %v1409_v55 }
 0x6f2   :  { %v1452_v23 = vmax.f32 %v1443_v36, 0.0 }
 0x6f4   :  { %1607 = vmatmul.msk.f32.gmra.mxu2 %vm1464_vm5, %v1452_v23 }
 0x704   :  { %v1445_v15 = vpop.f32.mrf.mxu1 }
 0x705   :  { %v1446_v51 = vadd.f32 %v1445_v15, %v1409_v55 }
 0x707   :  { %v1453_v31 = vmax.f32 %v1446_v51, 0.0 }
 0x709   :  { %1608 = vmatmul.msk.f32.gmra.mxu2 %vm1464_vm5, %v1453_v31 }
 0x72a   :  { %v1448_v43 = vpop.f32.mrf.mxu1 }
 0x72b   :  { %v1449_v5 = vadd.f32 %v1448_v43, %v1409_v55 }
 0x72d   :  { %v1454_v9 = vmax.f32 %v1449_v5, 0.0 }
 0x72f   :  { %1609 = vmatmul.msk.f32.gmra.mxu2 %vm1464_vm5, %v1454_v9 }
 0x76f   :  { %v1494_v19 = vpop.f32.mrf.mxu2 }
 0x770   :  { %v1495_v10 = vadd.f32 %v1494_v19, %v1463_v7 }
 0x772   :  { %v1506_v62 = vadd.f32 %v1495_v10, %v2519_v4 }
 0x774   :  { %1510 = vst.msk [vmem:[#allocation8] sm:$0xff] %vm77_vm0, %v1506_v62 }
 0x777   :  { %v1497_v39 = vpop.f32.mrf.mxu2 }
 0x778   :  { %v1498_v56 = vadd.f32 %v1497_v39, %v1463_v7 }
 0x77a   :  { %v1507_v12 = vadd.f32 %v1498_v56, %v2528_v8 }
 0x77c   :  { %1511 = vst.msk [vmem:[#allocation8 + $0x8] sm:$0xff] %vm77_vm0, %v1507_v12 }
 0x78c   :  { %v1500_v13 = vpop.f32.mrf.mxu2 }
 0x78d   :  { %v1501_v11 = vadd.f32 %v1500_v13, %v1463_v7 }
 0x78f   :  { %v1508_v17 = vadd.f32 %v1501_v11, %v2539_v54 }
 0x791   :  { %1512 = vst.msk [vmem:[#allocation8 + $0x10] sm:$0xff] %vm77_vm0, %v1508_v17 }
 0x7b2   :  { %v1503_v18 = vpop.f32.mrf.mxu2 }
 0x7b3   :  { %v1504_v45 = vadd.f32 %v1503_v18, %v1463_v7 }
 0x7b5   :  { %v1509_v4 = vadd.f32 %v1504_v45, %v2550_v32 }
 0x7b7   :  { %1513 = vst.msk [vmem:[#allocation8 + $0x18] sm:$0xff] %vm77_vm0, %v1509_v4 }
 0x7b8   :  { %1526 = dma.vmem_to_hbm [thread:$0]  %s1519_s17, 512, %s1521_s1, [#allocation4], %s1860_s9, %s1860_s9, %s1861_s10  }
 0x7b9   :  { %1857 = dma.done.wait [#allocation4], 512  }
 0x7ba   :  { %1858 = vsyncadd [#allocation4], 4294966784 }
 0x7bb   :  { %1531 = vsyncpa [#allocation3], 1 }
 0x7bc   :  { %1532 = vsyncpa [#allocation6], 1 }
 0x7bd   :  { %1533 = vsyncpa [#allocation4], 1 }

</bundles_post_ra>
